<compile_context>
chip_gen: v7x
topology: tpu7x:2x2x1
jax: 0.10.0
libtpu: 0.0.40
codegen_flags: <defaults>
</compile_context>

<pallas_src>
import functools

import jax
import jax.numpy as jnp
from jax import lax
from jax.experimental import pallas as pl
from jax.experimental.pallas import tpu as pltpu

BN_EPS = 1e-5
LANE = 128


def _round_up(a, b):
    return (a + b - 1) // b * b


def build_padded_graph(edge_index, num_nodes, nr, nc, adj_dtype):
    """Padded (A+I) edge-count matrix in the streaming dtype + f32 D^-1/2 vector.

    Built directly at padded shape and target dtype: one N^2-byte materialisation,
    no separate f32 adjacency + pad + cast copies.
    """
    row, col = edge_index[0], edge_index[1]
    loop = jnp.arange(num_nodes, dtype=row.dtype)
    src = jnp.concatenate([row, loop])
    dst = jnp.concatenate([col, loop])
    # aggregation target is `dst` (flow='source_to_target'): out[dst] += x[src]
    ones = jnp.ones((src.shape[0],), adj_dtype)
    a_counts = jnp.zeros((nr, nc), adj_dtype).at[dst, src].add(ones)
    deg = jnp.zeros((num_nodes,), jnp.float32).at[dst].add(1.0)
    dinv = jnp.where(deg > 0, 1.0 / jnp.sqrt(deg), 0.0)
    return a_counts, dinv


# ---------------------------------------------------------------------------
# Pass 1: tiled aggregation  y = dinv_row * ((A+I) @ h_scaled)  + fused BN partials
# ---------------------------------------------------------------------------
def agg_stats_kernel(a_ref, h_ref, dinv_ref, y_ref, stats_ref, *, tk, h_resident):
    k = pl.program_id(1)
    nk = pl.num_programs(1)

    @pl.when(k == 0)
    def _init():
        y_ref[...] = jnp.zeros_like(y_ref)

    # int8 (or bf16) binary/count adjacency tile -> bf16 for the MXU (values are exact).
    a_t = a_ref[...].astype(jnp.bfloat16)
    if h_resident:
        start = pl.multiple_of(k * tk, tk)
        h_k = h_ref[pl.ds(start, tk), :]        # slice of the VMEM-resident h
    else:
        h_k = h_ref[...]                        # k-streamed h tile
    # Accumulate directly into the resident f32 output block (no scratch, no final copy).
    y_ref[...] += jnp.dot(a_t, h_k, preferred_element_type=jnp.float32)

    @pl.when(k == nk - 1)
    def _finalize():
        # Apply the row-side degree normalisation, then fused per-row-tile BN partials.
        y = y_ref[...] * dinv_ref[...]           # (tm, C) * (tm, 1)
        y_ref[...] = y
        # Rows 0/1 carry sum / sum-of-squares; rows 2..7 are never read downstream.
        stats_ref[0:1, :] = jnp.sum(y, axis=0, keepdims=True)
        stats_ref[1:2, :] = jnp.sum(y * y, axis=0, keepdims=True)


# ---------------------------------------------------------------------------
# Pass 2: fused BatchNorm affine + ReLU (per-channel scale/shift precomputed)
# ---------------------------------------------------------------------------
def bn_relu_kernel(y_ref, scale_ref, shift_ref, o_ref):
    o_ref[...] = jnp.maximum(y_ref[...] * scale_ref[...] + shift_ref[...], 0.0)


def gnn_block_forward(x, edge_index, weight, bias, gamma, beta,
                      *, tm=1024, tk=1024, adj_dtype=jnp.int8):
    """x: [N, C_in] f32; edge_index: [2, E] int32; weight: [C_out, C_in] f32."""
    n, c_in = x.shape
    c_out = weight.shape[0]

    # ---- tiling / padding plan (lane-dense channels, 128-aligned tiles) ----
    c_pad = _round_up(c_out, LANE)               # exactly one lane multiple; never 256
    n_pad = _round_up(n, LANE)
    tm = max(LANE, min(_round_up(tm, LANE), n_pad))
    tk = max(LANE, min(_round_up(tk, LANE), n_pad))
    nr = _round_up(n, tm)                        # padded output-node rows
    nc = _round_up(n, tk)                        # padded contraction dim
    ni, nk = nr // tm, nc // tk

    # ---- graph preprocessing: padded binary (A+I) counts + D^-1/2 (plain JAX) ----
    a_p, dinv = build_padded_graph(edge_index, n, nr, nc, adj_dtype)
    dinv_rows = jnp.pad(dinv, (0, nr - n)).reshape(nr, 1)          # [nr, 1] f32

    # ---- GCNConv linear part, hoisted out of the hot loop (C_in is small) ----
    h = jnp.dot(x.astype(jnp.float32), weight.T.astype(jnp.float32),
                precision=lax.Precision.HIGHEST)                    # [N, C_out] f32
    # GCNConv bias intentionally dropped: a per-channel constant added before
    # training-mode BatchNorm cancels exactly with the batch mean.
    _ = bias
    h_scaled = dinv[:, None] * h                                    # column-side D^-1/2
    h_p = jnp.pad(h_scaled, ((0, nc - n), (0, c_pad - c_out))).astype(jnp.bfloat16)

    # ---- VMEM residency plan for h (v7x: 64 MiB/TC, v5e: small scoped default) ----
    h_resident = (2 * nc * c_pad * 2) <= (16 * 1024 * 1024)   # double-buffered residency
    if h_resident:
        h_spec = pl.BlockSpec((nc, c_pad), lambda i, k: (0, 0))     # fully resident
    else:
        h_spec = pl.BlockSpec((tk, c_pad), lambda i, k: (k, 0))     # streamed per k

    # ---- Pass 1: stream int8 (A+I) tiles, f32 accumulate directly into output ----
    y, stats = pl.pallas_call(
        functools.partial(agg_stats_kernel, tk=tk, h_resident=h_resident),
        out_shape=(
            jax.ShapeDtypeStruct((nr, c_pad), jnp.float32),         # y (normalised)
            jax.ShapeDtypeStruct((ni * 8, c_pad), jnp.float32),     # per-tile [sum; sumsq]
        ),
        grid_spec=pltpu.PrefetchScalarGridSpec(
            num_scalar_prefetch=0,
            grid=(ni, nk),
            in_specs=[
                pl.BlockSpec((tm, tk), lambda i, k: (i, k)),        # (A+I) tile stream
                h_spec,
                pl.BlockSpec((tm, 1), lambda i, k: (i, 0)),         # dinv row block
            ],
            out_specs=[
                pl.BlockSpec((tm, c_pad), lambda i, k: (i, 0)),     # resident across k
                pl.BlockSpec((8, c_pad), lambda i, k: (i, 0)),
            ],
        ),
        compiler_params=pltpu.CompilerParams(
            dimension_semantics=("parallel", "arbitrary"),
            vmem_limit_bytes=48 * 1024 * 1024),
    )(a_p, h_p, dinv_rows)

    # ---- tiny global stat reduction + per-channel scale/shift (plain JAX glue) ----
    stats = stats.reshape(ni, 8, c_pad)
    total = jnp.sum(stats[:, 0, :], axis=0)                         # [c_pad]
    total_sq = jnp.sum(stats[:, 1, :], axis=0)
    mean = total / n                                                # true node count
    # NOTE: E[y^2]-E[y]^2 in f32; fine for normalised activations. For very large-mean
    # activations switch to per-tile centered sums (Welford-style) if cancellation bites.
    var = jnp.maximum(total_sq / n - mean * mean, 0.0)              # biased batch var
    gamma_p = jnp.pad(gamma.astype(jnp.float32), (0, c_pad - c_out))
    beta_p = jnp.pad(beta.astype(jnp.float32), (0, c_pad - c_out))
    scale = (gamma_p * lax.rsqrt(var + BN_EPS)).reshape(1, c_pad)
    shift = (beta_p - mean * (gamma_p * lax.rsqrt(var + BN_EPS))).reshape(1, c_pad)

    # ---- Pass 2: lane-dense fused normalize-affine-ReLU with its own larger block ----
    g = 1
    while (ni % (2 * g) == 0) and ((tm * 2 * g) * c_pad * 4 <= 2 * 1024 * 1024):
        g *= 2
    tm2 = tm * g
    ni2 = nr // tm2

    out = pl.pallas_call(
        bn_relu_kernel,
        out_shape=jax.ShapeDtypeStruct((nr, c_pad), jnp.float32),
        grid_spec=pltpu.PrefetchScalarGridSpec(
            num_scalar_prefetch=0,
            grid=(ni2,),
            in_specs=[
                pl.BlockSpec((tm2, c_pad), lambda i: (i, 0)),
                pl.BlockSpec((1, c_pad), lambda i: (0, 0)),
                pl.BlockSpec((1, c_pad), lambda i: (0, 0)),
            ],
            out_specs=pl.BlockSpec((tm2, c_pad), lambda i: (i, 0)),
        ),
        compiler_params=pltpu.CompilerParams(
            dimension_semantics=("parallel",)),
    )(y, scale, shift)

    return out[:n, :c_out]


if __name__ == "__main__":
    # Small deterministic example: N=300 nodes (exercises padding + multi-tile
    # accumulation with tm=tk=128), C_in=8, C_out=32 (padded to 128 lanes).
    N, C_IN, C_OUT = 300, 8, 32
    key = jax.random.PRNGKey(0)
    kx, kw = jax.random.split(key)

    x = jax.random.normal(kx, (N, C_IN), dtype=jnp.float32)

    # Bidirectional ring graph (deterministic edge_index, [2, E]).
    src = jnp.arange(N, dtype=jnp.int32)
    dst = (src + 1) % N
    edge_index = jnp.stack(
        [jnp.concatenate([src, dst]), jnp.concatenate([dst, src])], axis=0)

    # GCNConv parameters: glorot weight [C_out, C_in], zero bias.
    limit = jnp.sqrt(6.0 / (C_IN + C_OUT))
    weight = jax.random.uniform(kw, (C_OUT, C_IN), jnp.float32, -limit, limit)
    bias = jnp.zeros((C_OUT,), jnp.float32)

    # BatchNorm1d affine parameters (default init).
    gamma = jnp.ones((C_OUT,), jnp.float32)
    beta = jnp.zeros((C_OUT,), jnp.float32)

    # Small tiles here purely to exercise the multi-tile two-pass path at toy size.
    try:
        out = gnn_block_forward(x, edge_index, weight, bias, gamma, beta,
                                tm=128, tk=128, adj_dtype=jnp.int8)
        jax.block_until_ready(out)
    except Exception:
        # Fallback: stream the binary adjacency in bf16 (values 0/1/2 are exact) if the
        # int8 load+upcast path is unavailable on this jax/libtpu build.
        out = gnn_block_forward(x, edge_index, weight, bias, gamma, beta,
                                tm=128, tk=128, adj_dtype=jnp.bfloat16)
        jax.block_until_ready(out)

    # ---------------- reference checks (plain JAX) ----------------
    row, col = edge_index[0], edge_index[1]
    loop = jnp.arange(N, dtype=jnp.int32)
    srcs = jnp.concatenate([row, loop])
    dsts = jnp.concatenate([col, loop])
    a_counts = jnp.zeros((N, N), jnp.float32).at[dsts, srcs].add(1.0)
    deg = jnp.zeros((N,), jnp.float32).at[dsts].add(1.0)
    dinv = jnp.where(deg > 0, 1.0 / jnp.sqrt(deg), 0.0)
    a_hat = dinv[:, None] * a_counts * dinv[None, :]
    h_f32 = jnp.dot(x, weight.T, precision=lax.Precision.HIGHEST)

    def bn_relu_ref(y):
        mu = y.mean(0, keepdims=True)
        var = ((y - mu) ** 2).mean(0, keepdims=True)
        return jnp.maximum((y - mu) / jnp.sqrt(var + BN_EPS) * gamma + beta, 0.0)

    # (1) Strict check against the same mixed-precision math the kernel uses
    #     (exact integer adjacency, h pre-scaled by dinv then bf16, f32 accumulation).
    h_q = (dinv[:, None] * h_f32).astype(jnp.bfloat16).astype(jnp.float32)
    y_strict = dinv[:, None] * jnp.dot(a_counts, h_q, precision=lax.Precision.HIGHEST)
    ref_strict = bn_relu_ref(y_strict)
    assert jnp.allclose(out, ref_strict, atol=5e-4, rtol=5e-4), (
        "strict mismatch, max abs diff = "
        + str(float(jnp.max(jnp.abs(out - ref_strict)))))

    # (2) Fidelity check against the full-f32 PyTorch-equivalent math; tolerance reflects
    #     the intentional bf16 cast of h (adjacency is now exact, accumulation stays f32).
    y_f = jnp.dot(a_hat, h_f32, precision=lax.Precision.HIGHEST) + bias[None, :]
    ref_f32 = bn_relu_ref(y_f)
    assert jnp.allclose(out, ref_f32, atol=3e-2, rtol=3e-2), (
        "f32 fidelity mismatch, max abs diff = "
        + str(float(jnp.max(jnp.abs(out - ref_f32)))))

    print("KERNEL_OK")
</pallas_src>

<mosaic_0001>
module attributes {stable_mosaic.version = 11 : i64} {
  func.func @agg_stats_kernel(%arg0: i32, %arg1: i32, %arg2: memref<128x128xi8, #tpu.memory_space<vmem>>, %arg3: memref<384x128xbf16, #tpu.memory_space<vmem>>, %arg4: memref<128x1xf32, #tpu.memory_space<vmem>>, %arg5: memref<128x128xf32, #tpu.memory_space<vmem>>, %arg6: memref<8x128xf32, #tpu.memory_space<vmem>>) attributes {dimension_semantics = [#tpu.dimension_semantics<parallel>, #tpu.dimension_semantics<arbitrary>], iteration_bounds = array<i64: 3, 3>, scalar_prefetch = 0 : i64, scratch_operands = 0 : i64, tpu.core_type = #tpu.core_type<tc>, window_params = [{transform_indices = @transform_0, window_bounds = array<i64: 128, 128>}, {pipeline_mode = #tpu.pipeline_mode<synchronous>, transform_indices = @transform_1, window_bounds = array<i64: 384, 128>}, {transform_indices = @transform_2, window_bounds = array<i64: 128, 1>}, {transform_indices = @transform_3, window_bounds = array<i64: 128, 128>}, {transform_indices = @transform_4, window_bounds = array<i64: 8, 128>}]} {
    %c0_i32 = arith.constant 0 : i32
    %0 = arith.cmpi eq, %arg1, %c0_i32 : i32
    %1 = arith.extui %0 : i1 to i32
    %c0_i32_0 = arith.constant 0 : i32
    %2 = arith.cmpi ne, %1, %c0_i32_0 : i32
    scf.if %2 {
      %cst_8 = arith.constant 0.000000e+00 : f32
      %16 = vector.broadcast %cst_8 : f32 to vector<128x128xf32>
      %c0_9 = arith.constant 0 : index
      %c0_10 = arith.constant 0 : index
      %17 = vector.load %arg5[%c0_9, %c0_10] : memref<128x128xf32, #tpu.memory_space<vmem>>, vector<128x128xf32>
      tpu.vector_store %arg5[%c0_9, %c0_10], %16 {strides = array<i32>} : memref<128x128xf32, #tpu.memory_space<vmem>>, vector<128x128xf32>,
    } else {
    }
    %c0 = arith.constant 0 : index
    %c0_1 = arith.constant 0 : index
    %3 = vector.load %arg2[%c0, %c0_1] : memref<128x128xi8, #tpu.memory_space<vmem>>, vector<128x128xi8>
    %4 = arith.sitofp %3 : vector<128x128xi8> to vector<128x128xbf16>
    %c128_i32 = arith.constant 128 : i32
    %5 = arith.muli %arg1, %c128_i32 : i32
    %6 = tpu.assume_multiple %5, 128 : i32
    %7 = arith.index_cast %6 : i32 to index
    %c0_2 = arith.constant 0 : index
    %8 = vector.load %arg3[%7, %c0_2] : memref<384x128xbf16, #tpu.memory_space<vmem>>, vector<128x128xbf16>
    %c0_3 = arith.constant 0 : index
    %c0_4 = arith.constant 0 : index
    %9 = vector.load %arg5[%c0_3, %c0_4] : memref<128x128xf32, #tpu.memory_space<vmem>>, vector<128x128xf32>
    %cst = arith.constant dense<0.000000e+00> : vector<128x128xf32>
    %10 = tpu.matmul %4, %8, %cst {dimension_numbers = #tpu.dot_dimension_numbers<[1], [0], [0], [1], [0, 0, 1, 1], [], []>} : vector<128x128xbf16>, vector<128x128xbf16>, vector<128x128xf32> -> vector<128x128xf32>
    %11 = arith.addf %9, %10 : vector<128x128xf32>
    %c0_5 = arith.constant 0 : index
    %c0_6 = arith.constant 0 : index
    %12 = vector.load %arg5[%c0_5, %c0_6] : memref<128x128xf32, #tpu.memory_space<vmem>>, vector<128x128xf32>
    tpu.vector_store %arg5[%c0_5, %c0_6], %11 {strides = array<i32>} : memref<128x128xf32, #tpu.memory_space<vmem>>, vector<128x128xf32>,
    %c2_i32 = arith.constant 2 : i32
    %13 = arith.cmpi eq, %arg1, %c2_i32 : i32
    %14 = arith.extui %13 : i1 to i32
    %c0_i32_7 = arith.constant 0 : i32
    %15 = arith.cmpi ne, %14, %c0_i32_7 : i32
    scf.if %15 {
      %c0_8 = arith.constant 0 : index
      %c0_9 = arith.constant 0 : index
      %16 = vector.load %arg5[%c0_8, %c0_9] : memref<128x128xf32, #tpu.memory_space<vmem>>, vector<128x128xf32>
      %c0_10 = arith.constant 0 : index
      %c0_11 = arith.constant 0 : index
      %17 = vector.load %arg4[%c0_10, %c0_11] : memref<128x1xf32, #tpu.memory_space<vmem>>, vector<128x1xf32>
      %18 = vector.broadcast %17 : vector<128x1xf32> to vector<128x128xf32>
      %19 = arith.mulf %16, %18 : vector<128x128xf32>
      %c0_12 = arith.constant 0 : index
      %c0_13 = arith.constant 0 : index
      %20 = vector.load %arg5[%c0_12, %c0_13] : memref<128x128xf32, #tpu.memory_space<vmem>>, vector<128x128xf32>
      tpu.vector_store %arg5[%c0_12, %c0_13], %19 {strides = array<i32>} : memref<128x128xf32, #tpu.memory_space<vmem>>, vector<128x128xf32>,
      %cst_14 = arith.constant dense<0.000000e+00> : vector<128xf32>
      %21 = vector.multi_reduction <add>, %19, %cst_14 [0] : vector<128x128xf32> to vector<128xf32>
      %22 = vector.shape_cast %21 : vector<128xf32> to vector<1x128xf32>
      %c0_15 = arith.constant 0 : index
      %c0_16 = arith.constant 0 : index
      %23 = vector.load %arg6[%c0_15, %c0_16] : memref<8x128xf32, #tpu.memory_space<vmem>>, vector<1x128xf32>
      tpu.vector_store %arg6[%c0_15, %c0_16], %22 {strides = array<i32>} : memref<8x128xf32, #tpu.memory_space<vmem>>, vector<1x128xf32>,
      %24 = arith.mulf %19, %19 : vector<128x128xf32>
      %cst_17 = arith.constant dense<0.000000e+00> : vector<128xf32>
      %25 = vector.multi_reduction <add>, %24, %cst_17 [0] : vector<128x128xf32> to vector<128xf32>
      %26 = vector.shape_cast %25 : vector<128xf32> to vector<1x128xf32>
      %c1 = arith.constant 1 : index
      %c0_18 = arith.constant 0 : index
      %27 = vector.load %arg6[%c1, %c0_18] : memref<8x128xf32, #tpu.memory_space<vmem>>, vector<1x128xf32>
      tpu.vector_store %arg6[%c1, %c0_18], %26 {strides = array<i32>} : memref<8x128xf32, #tpu.memory_space<vmem>>, vector<1x128xf32>,
    } else {
    }
    return
  }
  func.func @transform_0(%arg0: i32, %arg1: i32) -> (i32, i32) {
    %c0_i32 = arith.constant 0 : i32
    return %arg0, %arg1 : i32, i32
  }
  func.func @transform_1(%arg0: i32, %arg1: i32) -> (i32, i32) {
    %c0_i32 = arith.constant 0 : i32
    %c0_i32_0 = arith.constant 0 : i32
    %c0_i32_1 = arith.constant 0 : i32
    return %c0_i32, %c0_i32_0 : i32, i32
  }
  func.func @transform_2(%arg0: i32, %arg1: i32) -> (i32, i32) {
    %c0_i32 = arith.constant 0 : i32
    %c0_i32_0 = arith.constant 0 : i32
    return %arg0, %c0_i32 : i32, i32
  }
  func.func @transform_3(%arg0: i32, %arg1: i32) -> (i32, i32) {
    %c0_i32 = arith.constant 0 : i32
    %c0_i32_0 = arith.constant 0 : i32
    return %arg0, %c0_i32 : i32, i32
  }
  func.func @transform_4(%arg0: i32, %arg1: i32) -> (i32, i32) {
    %c0_i32 = arith.constant 0 : i32
    %c0_i32_0 = arith.constant 0 : i32
    return %arg0, %c0_i32 : i32, i32
  }
}

module attributes {stable_mosaic.version = 11 : i64} {
  func.func @agg_stats_kernel(%arg0: i32, %arg1: i32, %arg2: memref<128x128xbf16, #tpu.memory_space<vmem>>, %arg3: memref<384x128xbf16, #tpu.memory_space<vmem>>, %arg4: memref<128x1xf32, #tpu.memory_space<vmem>>, %arg5: memref<128x128xf32, #tpu.memory_space<vmem>>, %arg6: memref<8x128xf32, #tpu.memory_space<vmem>>) attributes {dimension_semantics = [#tpu.dimension_semantics<parallel>, #tpu.dimension_semantics<arbitrary>], iteration_bounds = array<i64: 3, 3>, scalar_prefetch = 0 : i64, scratch_operands = 0 : i64, tpu.core_type = #tpu.core_type<tc>, window_params = [{transform_indices = @transform_0, window_bounds = array<i64: 128, 128>}, {pipeline_mode = #tpu.pipeline_mode<synchronous>, transform_indices = @transform_1, window_bounds = array<i64: 384, 128>}, {transform_indices = @transform_2, window_bounds = array<i64: 128, 1>}, {transform_indices = @transform_3, window_bounds = array<i64: 128, 128>}, {transform_indices = @transform_4, window_bounds = array<i64: 8, 128>}]} {
    %c0_i32 = arith.constant 0 : i32
    %0 = arith.cmpi eq, %arg1, %c0_i32 : i32
    %1 = arith.extui %0 : i1 to i32
    %c0_i32_0 = arith.constant 0 : i32
    %2 = arith.cmpi ne, %1, %c0_i32_0 : i32
    scf.if %2 {
      %cst_8 = arith.constant 0.000000e+00 : f32
      %15 = vector.broadcast %cst_8 : f32 to vector<128x128xf32>
      %c0_9 = arith.constant 0 : index
      %c0_10 = arith.constant 0 : index
      %16 = vector.load %arg5[%c0_9, %c0_10] : memref<128x128xf32, #tpu.memory_space<vmem>>, vector<128x128xf32>
      tpu.vector_store %arg5[%c0_9, %c0_10], %15 {strides = array<i32>} : memref<128x128xf32, #tpu.memory_space<vmem>>, vector<128x128xf32>,
    } else {
    }
    %c0 = arith.constant 0 : index
    %c0_1 = arith.constant 0 : index
    %3 = vector.load %arg2[%c0, %c0_1] : memref<128x128xbf16, #tpu.memory_space<vmem>>, vector<128x128xbf16>
    %c128_i32 = arith.constant 128 : i32
    %4 = arith.muli %arg1, %c128_i32 : i32
    %5 = tpu.assume_multiple %4, 128 : i32
    %6 = arith.index_cast %5 : i32 to index
    %c0_2 = arith.constant 0 : index
    %7 = vector.load %arg3[%6, %c0_2] : memref<384x128xbf16, #tpu.memory_space<vmem>>, vector<128x128xbf16>
    %c0_3 = arith.constant 0 : index
    %c0_4 = arith.constant 0 : index
    %8 = vector.load %arg5[%c0_3, %c0_4] : memref<128x128xf32, #tpu.memory_space<vmem>>, vector<128x128xf32>
    %cst = arith.constant dense<0.000000e+00> : vector<128x128xf32>
    %9 = tpu.matmul %3, %7, %cst {dimension_numbers = #tpu.dot_dimension_numbers<[1], [0], [0], [1], [0, 0, 1, 1], [], []>} : vector<128x128xbf16>, vector<128x128xbf16>, vector<128x128xf32> -> vector<128x128xf32>
    %10 = arith.addf %8, %9 : vector<128x128xf32>
    %c0_5 = arith.constant 0 : index
    %c0_6 = arith.constant 0 : index
    %11 = vector.load %arg5[%c0_5, %c0_6] : memref<128x128xf32, #tpu.memory_space<vmem>>, vector<128x128xf32>
    tpu.vector_store %arg5[%c0_5, %c0_6], %10 {strides = array<i32>} : memref<128x128xf32, #tpu.memory_space<vmem>>, vector<128x128xf32>,
    %c2_i32 = arith.constant 2 : i32
    %12 = arith.cmpi eq, %arg1, %c2_i32 : i32
    %13 = arith.extui %12 : i1 to i32
    %c0_i32_7 = arith.constant 0 : i32
    %14 = arith.cmpi ne, %13, %c0_i32_7 : i32
    scf.if %14 {
      %c0_8 = arith.constant 0 : index
      %c0_9 = arith.constant 0 : index
      %15 = vector.load %arg5[%c0_8, %c0_9] : memref<128x128xf32, #tpu.memory_space<vmem>>, vector<128x128xf32>
      %c0_10 = arith.constant 0 : index
      %c0_11 = arith.constant 0 : index
      %16 = vector.load %arg4[%c0_10, %c0_11] : memref<128x1xf32, #tpu.memory_space<vmem>>, vector<128x1xf32>
      %17 = vector.broadcast %16 : vector<128x1xf32> to vector<128x128xf32>
      %18 = arith.mulf %15, %17 : vector<128x128xf32>
      %c0_12 = arith.constant 0 : index
      %c0_13 = arith.constant 0 : index
      %19 = vector.load %arg5[%c0_12, %c0_13] : memref<128x128xf32, #tpu.memory_space<vmem>>, vector<128x128xf32>
      tpu.vector_store %arg5[%c0_12, %c0_13], %18 {strides = array<i32>} : memref<128x128xf32, #tpu.memory_space<vmem>>, vector<128x128xf32>,
      %cst_14 = arith.constant dense<0.000000e+00> : vector<128xf32>
      %20 = vector.multi_reduction <add>, %18, %cst_14 [0] : vector<128x128xf32> to vector<128xf32>
      %21 = vector.shape_cast %20 : vector<128xf32> to vector<1x128xf32>
      %c0_15 = arith.constant 0 : index
      %c0_16 = arith.constant 0 : index
      %22 = vector.load %arg6[%c0_15, %c0_16] : memref<8x128xf32, #tpu.memory_space<vmem>>, vector<1x128xf32>
      tpu.vector_store %arg6[%c0_15, %c0_16], %21 {strides = array<i32>} : memref<8x128xf32, #tpu.memory_space<vmem>>, vector<1x128xf32>,
      %23 = arith.mulf %18, %18 : vector<128x128xf32>
      %cst_17 = arith.constant dense<0.000000e+00> : vector<128xf32>
      %24 = vector.multi_reduction <add>, %23, %cst_17 [0] : vector<128x128xf32> to vector<128xf32>
      %25 = vector.shape_cast %24 : vector<128xf32> to vector<1x128xf32>
      %c1 = arith.constant 1 : index
      %c0_18 = arith.constant 0 : index
      %26 = vector.load %arg6[%c1, %c0_18] : memref<8x128xf32, #tpu.memory_space<vmem>>, vector<1x128xf32>
      tpu.vector_store %arg6[%c1, %c0_18], %25 {strides = array<i32>} : memref<8x128xf32, #tpu.memory_space<vmem>>, vector<1x128xf32>,
    } else {
    }
    return
  }
  func.func @transform_0(%arg0: i32, %arg1: i32) -> (i32, i32) {
    %c0_i32 = arith.constant 0 : i32
    return %arg0, %arg1 : i32, i32
  }
  func.func @transform_1(%arg0: i32, %arg1: i32) -> (i32, i32) {
    %c0_i32 = arith.constant 0 : i32
    %c0_i32_0 = arith.constant 0 : i32
    %c0_i32_1 = arith.constant 0 : i32
    return %c0_i32, %c0_i32_0 : i32, i32
  }
  func.func @transform_2(%arg0: i32, %arg1: i32) -> (i32, i32) {
    %c0_i32 = arith.constant 0 : i32
    %c0_i32_0 = arith.constant 0 : i32
    return %arg0, %c0_i32 : i32, i32
  }
  func.func @transform_3(%arg0: i32, %arg1: i32) -> (i32, i32) {
    %c0_i32 = arith.constant 0 : i32
    %c0_i32_0 = arith.constant 0 : i32
    return %arg0, %c0_i32 : i32, i32
  }
  func.func @transform_4(%arg0: i32, %arg1: i32) -> (i32, i32) {
    %c0_i32 = arith.constant 0 : i32
    %c0_i32_0 = arith.constant 0 : i32
    return %arg0, %c0_i32 : i32, i32
  }
}

</mosaic_0001>

<bundles_post_ra>
// kernel: tpu_custom_call.1
= control target key start
LH: loop header
LB: loop body
LE: loop exit
PB: predicated region body
PF: predicated region fallthrough
CT: control target
= control target key end

     0   :  { %10 = vsyncpa [#allocation4], 0  ;;  %s1729_s0 = inlined_call_operand.vmem [shape: s8[384,384], index: 0, kind: input, shape index: {}]   ;;  %s1730_s1 = inlined_call_operand.hbm [shape: bf16[384,128], index: 1, kind: input, shape index: {}]   ;;  %s1731_s2 = inlined_call_operand.vmem [shape: f32[384,1], index: 2, kind: input, shape index: {}]   ;;  %s1732_s3 = inlined_call_operand.hbm [shape: f32[384,128], index: 3, kind: output, shape index: {0}]   ;;  %s1733_s4 = inlined_call_operand.hbm [shape: f32[24,128], index: 4, kind: output, shape index: {1}]  }
   0x1   :  { %11 = vsyncpa [#allocation5], 0 }
   0x2   :  { %13 = vsyncpa [#allocation5 + $0x1], 0 }
   0x3   :  { %14 = vsyncpa [#allocation8], 0 }
   0x4   :  { %16 = vsyncpa [#allocation8 + $0x1], 0  ;;  %s1365_s15 = smov 0   ;;  %s1367_s16 = smov 0  }
   0x5   :  { %s1369_s17 = smov 0   ;;  %s1371_s18 = smov 0  }
   0x6   :  { %s1373_s19 = smov 0   ;;  %s1375_s20 = smov 0  }
   0x7   :  { %s1377_s21 = smov 0   ;;  %s1379_s22 = smov 0  }
   0x8   :  { %s1381_s23 = smov 0   ;;  %s1383_s24 = smov 0  }
   0x9 LB: > { %1742 = sst [smem:[#allocation12_spill]] %s1301_s17  ;;  %s935_s25 = sadd.s32 4294967295, %s1329_s24   ;;  %s1329_s24 = sphi %s1383_s24, %s22_s24   ;;  %s1325_s23 = sphi %s1381_s23, %s1772_s23   ;;  %s1321_s22 = sphi %s1379_s22, %s1771_s22   ;;  %s1317_s21 = sphi %s1377_s21, %s1770_s21   ;;  %s1313_s20 = sphi %s1375_s20, %s1769_s20   ;;  %s1309_s19 = sphi %s1373_s19, %s1768_s19   ;;  %s1305_s18 = sphi %s1371_s18, %s1767_s18   ;;  %s1301_s17 = sphi %s1369_s17, %s1761_s17   ;;  %s1297_s16 = sphi %s1367_s16, %s1766_s16   ;;  %s1293_s15 = sphi %s1365_s15, %s1765_s15  }
   0xa   : > { %s936_s26 = sadd.s32 4294967294, %s1329_s24   ;;  %s31_s27 = sadd.s32 1, %s1321_s22 }
   0xb   : > { %s34_s28 = sadd.s32 1, %s1325_s23  ;;  %p32_p0 = scmp.ge.s32.totalorder %s31_s27, 3 }
   0xc   : > { %s43_s29 = sadd.s32 1, %s1309_s19  ;;  %p50_p1 = scmp.ne.s32.totalorder %s1309_s19, %s1305_s18 }
   0xd   : > { %p51_p2 = scmp.eq.s32.totalorder %s1329_s24, 0  ;;  %s1774_s27 = smov (%p32_p0, %s31_s27), 0 }
   0xe   : > { %1743 = sst [smem:[#allocation13_spill]] %s1774_s27  ;;  %s1776_s28 = smov (!%p32_p0, %s34_s28), %s1325_s23 }
   0xf   : > { %s39_s30 = ssub.s32 %s1321_s22, %s1774_s27  ;;  %p1428_p3 = por %p51_p2, %p50_p1 }
  0x10   : > { %p36_p4 = scmp.ge.s32.totalorder %s1776_s28, 3  ;;  %s116_s6 = sadd.s32 1, %s1301_s17 }
  0x11   : > { %s1744_s5 = scalar_select %p1428_p3, 1, 0 }
  0x12   : > { %p126_p5 = scmp.ne.s32.totalorder %s1301_s17, %s1297_s16  ;;  %p127_p6 = scmp.eq.s32.totalorder %s935_s25, 8 }
  0x13   : > { %s1778_s28 = smov (%p36_p4, %s1776_s28), 0  ;;  %p132_p8 = scmp.ne.s32.totalorder %s1297_s16, %s1293_s15 }
  0x14   : > { %1745 = sst [smem:[#allocation14_spill]] %s1778_s28  ;;  %p1437_p7 = por %p127_p6, %p126_p5 }
  0x15   : > { %s38_s8 = ssub.s32 %s1325_s23, %s1778_s28  ;;  %p133_p9 = scmp.eq.s32.totalorder %s936_s26, 8 }
  0x16   : > { %s1746_s7 = scalar_select %p1437_p7, 1, 0 }
  0x17   : > { %s40_s9 = sor.u32 %s39_s30, %s38_s8  ;;  %p114_p10 = scmp.eq.s32.totalorder %s38_s8, 0 }
  0x18   : > { %p41_p11 = scmp.eq.s32.totalorder %s40_s9, 0  ;;  %p1445_p12 = por %p133_p9, %p132_p8 }
  0x19   : > { %s1450_s11 = scalar_select %p114_p10, %s1301_s17, %s116_s6  }
  0x1a   : > { %s1747_s10 = scalar_select %p1445_p12, 1, 0 }
  0x1b   : > { %1749 = sst [smem:[#allocation16_spill]] %s1450_s11  ;;  %p937_p13 = scmp.ge.s32.totalorder %s1329_s24, 1 }
  0x1c   : > { %1748 = sst [smem:[#allocation15_spill]] %s1747_s10  ;;  %p166_p0 = scmp.lt.s32.totalorder %s1329_s24, 10 }
  0x1d   : > { %s1453_s12 = scalar_select %p41_p11, %s1309_s19, %s43_s29  }
  0x1e   : > { %p1457_p1 = scmp.eq.s32.totalorder %s935_s25, 0  ;;  %p1461_p2 = pnand %p937_p13, %p166_p0 }
  0x1f   : > { %1750 = sst [smem:[#allocation17_spill]] %s1453_s12  ;;  %s1331_s26 = smov [#allocation3]  }
  0x20   : > { %s1751_s13 = scalar_select %p1457_p1, 1, 0 }
  0x21   : > { %s1752_s14 = scalar_select %p1461_p2, 1, 0 }
  0x22   : > { %s178_s30 = sshll.u32 %s1331_s26, 4  ;;  %p1044_p4 = pneg %p1461_p2  ;;  %s179_s30 = int_to_ptr.vmem [resolvable:$true] %s178_s30 }
  0x23   : > { %s1155_s8 = scalar_lea.hbm %s1730_s1, 3072 }
  0x24   : > { %p1469_p5 = pnand %p1457_p1, %p1044_p4  ;;  %p1156_p6 = scmp.ne.s32.totalorder %s1730_s1, %s1155_s8 }
  0x25   : > { %p1162_p11 = scmp.lt.u32.totalorder %s1155_s8, %s1730_s1 }
  0x26   : > { %p1157_p8 = pneg %p1469_p5 }
  0x28   : > { %p1158_p9 = pnand %p1157_p8, %p1156_p6 }
  0x2a   : > { %p1159_p10 = pneg %p1158_p9 }
  0x2c   : > { %p1164_p13 = pnand %p1162_p11, %p1159_p10 }
  0x2e   : > { %1167 = shalt.err (!%p1164_p13)
}
  0x2f   : > { %s1168_s12 = scalar_lea.vmem %s179_s30, 3072  ;;  %p1176_p7 = scmp.lt.s32.totalorder %s179_s30, %s179_s30 }
  0x30   : > { %p1169_p0 = scmp.ne.s32.totalorder %s179_s30, %s1168_s12  ;;  %p1177_p1 = scmp.lt.s32.totalorder %s1168_s12, %s1168_s12 }
  0x32   : > { %p1171_p4 = pnand %p1169_p0, %p1157_p8  ;;  %p1178_p2 = por %p1177_p1, %p1176_p7 }
  0x34   : > { %p1172_p12 = pneg %p1171_p4 }
  0x36   : > { %p1179_p3 = pnand %p1178_p2, %p1172_p12 }
  0x38   : > { %1182 = shalt.err (!%p1179_p3)
}
  0x39   : > { %s1332_s28 = smov 64   ;;  %s1333_s25 = smov 4  }
  0x3a   : > { %1047 = dma.hbm_to_vmem [thread:$0]  (!%p1469_p5), %s1730_s1, 3072, %s179_s30, [#allocation4], %s1332_s28, %s1332_s28, %s1333_s25  }
  0x3b   : > { %p939_p6 = scmp.ge.s32.totalorder %s1329_s24, 9 }
  0x3c   : > { %p1754_p9 = scmp.ne.s32.totalorder (!%p939_p6), %s1744_s5, 0 }
  0x3d   : > { %188 = sbr.rel (%p939_p6) target bundleno = 77 (0x4d), region = 20 }
  0x44   : > { %191 = sbr.rel (!%p1754_p9) target bundleno = 77 (0x4d), region = 24  ;;  %s193_s27 = sand.u32 (%p1754_p9), 1, %s1309_s19  }
  0x45   : > { %s1035_s12 = smul.u32 (%p1754_p9), 12, %s1325_s23  ;;  %s940_s8 = sshll.u32 (%p1754_p9), %s193_s27, 5 }
  0x46   : > { %s195_s30 = scalar_lea.vmem (%p1754_p9), [#allocation2], %s940_s8 }
  0x47   : > { %s198_s26 = sadd.s32 (%p1754_p9), %s1321_s22, %s1035_s12 }
  0x48   : > { %s943_s11 = sshll.u32 (%p1754_p9), %s198_s26, 3 }
  0x49   : > { %s200_s10 = scalar_lea.vmem (%p1754_p9), %s1729_s0, %s943_s11 }
  0x4a   : > { %v234_v0 = vld [vmem:[%s200_s10] sm:$0xff] (%p1754_p9)  ;;  %v236_v1 = vld [vmem:[%s200_s10 + $0x18] sm:$0xff] (%p1754_p9)  ;;  %v238_v2 = vld [vmem:[%s200_s10 + $0x30] sm:$0xff] (%p1754_p9) }
  0x4b   : > { %235 = vst [vmem:[%s195_s30] sm:$0xff] %v234_v0  ;;  %237 = vst [vmem:[%s195_s30 + $0x8] sm:$0xff] %v236_v1  ;;  %v240_v3 = vld [vmem:[%s200_s10 + $0x48] sm:$0xff] }
  0x4c   : > { %239 = vst [vmem:[%s195_s30 + $0x10] sm:$0xff] %v238_v2  ;;  %241 = vst [vmem:[%s195_s30 + $0x18] sm:$0xff] %v240_v3 }
  0x4d PF: > { %p1755_p3 = scmp.ne.s32.totalorder %s1752_s14, 0 }
  0x4e   : > { %s262_s5 = sand.u32 (!%p1755_p3), 1, %s1305_s18   ;;  %p1756_p7 = scmp.ne.s32.totalorder (!%p1755_p3), %s1751_s13, 0 }
  0x4f   : > { %259 = sbr.rel (%p1755_p3) target bundleno = 549 (0x225), region = 66  ;;  %s945_s28 = sshll.u32 (!%p1755_p3), %s262_s5, 5 }
  0x50   : > { %s1501_s17 = scalar_lea.vmem (!%p1755_p3), [#allocation2], %s945_s28 }
  0x56   : > { %1280 = dma.done.wait (%p1756_p7), [#allocation4], 3072  }
  0x57   : > { %1282 = vsyncadd (%p1756_p7), [#allocation4], 4294964224  ;;  %s1508_s10 = sand.u32 1, %s1297_s16   ;;  %s949_s11 = sshll.u32 %s1317_s21, 4 }
  0x58   : > { %s947_s14 = sshll.u32 %s1508_s10, 7  ;;  %s948_s25 = sshll.u32 %s1508_s10, 3 }
  0x59   : > { %p303_p12 = scmp.lt.s32.totalorder %s949_s11, 47  ;;  %s1518_s12 = scalar_lea.vmem [#allocation6], %s947_s14 }
  0x5a   : > { %s1520_s13 = scalar_lea.vmem [#allocation7], %s948_s25  ;;  %p951_p1 = scmp.ne.s32.totalorder %s1313_s20, 0 }
  0x5b   : > { %s1780_s11 = smov (!%p303_p12, %s949_s11), 47  ;;  %v1334_v4 = vmov (!%p951_p1), 0.0  }
  0x5c   : > { %s950_s18 = sshll.u32 %s1780_s11, 3  ;;  %313 = sbr.rel (%p951_p1) target bundleno = 100 (0x64), region = 78  ;;  %314 = vst [vmem:[%s1518_s12] sm:$0xff] (!%p951_p1), %v1334_v4  ;;  %315 = vst [vmem:[%s1518_s12 + $0x8] sm:$0xff] (!%p951_p1), %v1334_v4 }
  0x5d   : > { %s1516_s27 = scalar_lea.vmem %s1731_s2, %s950_s18  ;;  %316 = vst [vmem:[%s1518_s12 + $0x10] sm:$0xff] (!%p951_p1), %v1334_v4  ;;  %317 = vst [vmem:[%s1518_s12 + $0x18] sm:$0xff] (!%p951_p1), %v1334_v4 }
  0x5e   : > { %318 = vst [vmem:[%s1518_s12 + $0x20] sm:$0xff] (!%p951_p1), %v1334_v4  ;;  %319 = vst [vmem:[%s1518_s12 + $0x28] sm:$0xff] (!%p951_p1), %v1334_v4 }
  0x5f   : > { %320 = vst [vmem:[%s1518_s12 + $0x30] sm:$0xff] (!%p951_p1), %v1334_v4  ;;  %321 = vst [vmem:[%s1518_s12 + $0x38] sm:$0xff] (!%p951_p1), %v1334_v4 }
  0x60   : > { %322 = vst [vmem:[%s1518_s12 + $0x40] sm:$0xff] (!%p951_p1), %v1334_v4  ;;  %323 = vst [vmem:[%s1518_s12 + $0x48] sm:$0xff] (!%p951_p1), %v1334_v4 }
  0x61   : > { %324 = vst [vmem:[%s1518_s12 + $0x50] sm:$0xff] (!%p951_p1), %v1334_v4  ;;  %325 = vst [vmem:[%s1518_s12 + $0x58] sm:$0xff] (!%p951_p1), %v1334_v4 }
  0x62   : > { %326 = vst [vmem:[%s1518_s12 + $0x60] sm:$0xff] (!%p951_p1), %v1334_v4  ;;  %327 = vst [vmem:[%s1518_s12 + $0x68] sm:$0xff] (!%p951_p1), %v1334_v4 }
  0x63   : > { %328 = vst [vmem:[%s1518_s12 + $0x70] sm:$0xff] %v1334_v4  ;;  %329 = vst [vmem:[%s1518_s12 + $0x78] sm:$0xff] %v1334_v4 }
  0x64 PF: > { %s952_s8 = sshll.u32 %s1313_s20, 7  ;;  %v330_v5 = vld [vmem:[%s1501_s17] sm:$0xff]  ;;  %v332_v6 = vld [vmem:[%s1501_s17 + $0x10] sm:$0xff]  ;;  %v331_v17 = vld [vmem:[%s1501_s17 + $0x8] sm:$0xff]  ;;  %p962_p2 = scmp.ne.s32.totalorder %s1313_s20, 2 }
  0x65   : > { %s343_s26 = sshra.s32 %s952_s8, 3  ;;  %v334_v7 = vunpack.c.l.s8.bf16 %v330_v5  ;;  %v338_v8 = vunpack.c.l.s8.bf16 %v332_v6  ;;  %v333_v18 = vld [vmem:[%s1501_s17 + $0x18] sm:$0xff]  ;;  %v335_v19 = vunpack.c.h.s8.bf16 %v330_v5  ;;  %v339_v20 = vunpack.c.h.s8.bf16 %v332_v6  ;;  %v365_v25 = vld [vmem:[%s1518_s12 + $0x10] sm:$0xff]  ;;  %v363_v27 = vld [vmem:[%s1518_s12] sm:$0xff] }
  0x66   : > { %s953_s29 = sshll.u32 %s343_s26, 2  ;;  %v336_v21 = vunpack.c.l.s8.bf16 %v331_v17  ;;  %v340_v22 = vunpack.c.l.s8.bf16 %v333_v18  ;;  %v337_v23 = vunpack.c.h.s8.bf16 %v331_v17  ;;  %v341_v24 = vunpack.c.h.s8.bf16 %v333_v18  ;;  %v366_v31 = vld [vmem:[%s1518_s12 + $0x18] sm:$0xff]  ;;  %v364_v37 = vld [vmem:[%s1518_s12 + $0x8] sm:$0xff]  ;;  %v367_v51 = vld [vmem:[%s1518_s12 + $0x20] sm:$0xff] }
  0x67   : > { %1003 = vmatprep.mubr.bf16.mxu0 %v334_v7  ;;  %1011 = vmatprep.mubr.bf16.mxu1 %v338_v8  ;;  %s1542_s30 = scalar_lea.vmem [#allocation3], %s953_s29  ;;  %v369_v49 = vld [vmem:[%s1518_s12 + $0x30] sm:$0xff]  ;;  %v370_v55 = vld [vmem:[%s1518_s12 + $0x38] sm:$0xff]  ;;  %v368_v61 = vld [vmem:[%s1518_s12 + $0x28] sm:$0xff] }
  0x68   : > { %v1145_v9 = vld [vmem:[%s1542_s30] sm:$0xff]   ;;  %v1146_v10 = vld [vmem:[%s1542_s30 + $0x8] sm:$0xff]   ;;  %v1147_v11 = vld [vmem:[%s1542_s30 + $0x10] sm:$0xff]  }
  0x69   : > { %987 = vmatprep.subr.bf16.mxu0 %v1145_v9  ;;  %1019 = vmatprep.subr.bf16.mxu1 %v1145_v9  ;;  %v1148_v12 = vld [vmem:[%s1542_s30 + $0x18] sm:$0xff]   ;;  %v1149_v13 = vld [vmem:[%s1542_s30 + $0x20] sm:$0xff]   ;;  %v1150_v14 = vld [vmem:[%s1542_s30 + $0x28] sm:$0xff]  }
  0x6a   : > { %988 = vmatpush3.bf16.msra.mxu0 %v1145_v9  ;;  %1027 = vmatpush3.bf16.msra.mxu1 %v1145_v9  ;;  %v1151_v15 = vld [vmem:[%s1542_s30 + $0x30] sm:$0xff]   ;;  %v1152_v16 = vld [vmem:[%s1542_s30 + $0x38] sm:$0xff]   ;;  %v371_v28 = vld [vmem:[%s1518_s12 + $0x40] sm:$0xff] }
  0x6b   : > { %989 = vmatprep.subr.bf16.mxu0 %v1146_v10  ;;  %1020 = vmatprep.subr.bf16.mxu1 %v1146_v10  ;;  %v373_v26 = vld [vmem:[%s1518_s12 + $0x50] sm:$0xff]  ;;  %v374_v32 = vld [vmem:[%s1518_s12 + $0x58] sm:$0xff]  ;;  %v372_v38 = vld [vmem:[%s1518_s12 + $0x48] sm:$0xff] }
  0x6c   : > { %v377_v50 = vld [vmem:[%s1518_s12 + $0x70] sm:$0xff]  ;;  %v375_v52 = vld [vmem:[%s1518_s12 + $0x60] sm:$0xff]  ;;  %v378_v56 = vld [vmem:[%s1518_s12 + $0x78] sm:$0xff] }
  0x6d   : > { %v376_v62 = vld [vmem:[%s1518_s12 + $0x68] sm:$0xff]  ;;  %v578_v9 = vld [vmem:[%s1516_s27 + $0x10] sm:$0xff] (!%p962_p2) }
  0x6e   : > { %990 = vmatpush3.bf16.msra.mxu0 %v1146_v10  ;;  %1028 = vmatpush3.bf16.msra.mxu1 %v1146_v10  ;;  %v576_v10 = vld [vmem:[%s1516_s27] sm:$0xff] (!%p962_p2)  ;;  %v582_v17 = vld [vmem:[%s1516_s27 + $0x30] sm:$0xff] (!%p962_p2)  ;;  %v585_v18 = vld [vmem:[%s1516_s27 + $0x48] sm:$0xff] (!%p962_p2) }
  0x6f   : > { %991 = vmatprep.subr.bf16.mxu0 %v1147_v11  ;;  %1021 = vmatprep.subr.bf16.mxu1 %v1147_v11 }
  0x72   : > { %992 = vmatpush3.bf16.msra.mxu0 %v1147_v11  ;;  %1029 = vmatpush3.bf16.msra.mxu1 %v1147_v11  ;;  %v1335_v11 = vmov (!%p962_p2), 0  }
  0x73   : > { %993 = vmatprep.subr.bf16.mxu0 %v1148_v12  ;;  %1022 = vmatprep.subr.bf16.mxu1 %v1148_v12 }
  0x74   : > { %1154 = vset.pattern.permute.xlu1 (!%p962_p2), %v1335_v11  ;;  %1153 = vset.pattern.permute.xlu0 (!%p962_p2), %v1335_v11 }
  0x75   : > { %604 = vperm.xlu1 (!%p962_p2), %1154, %v578_v9   ;;  %594 = vperm.xlu0 (!%p962_p2), %1153, %v576_v10  }
  0x76   : > { %994 = vmatpush3.bf16.msra.mxu0 %v1148_v12  ;;  %1030 = vmatpush3.bf16.msra.mxu1 %v1148_v12  ;;  %v579_v12 = vld [vmem:[%s1516_s27 + $0x18] sm:$0xff] (!%p962_p2) }
  0x77   : > { %995 = vmatprep.subr.bf16.mxu0 %v1149_v13  ;;  %1023 = vmatprep.subr.bf16.mxu1 %v1149_v13 }
  0x79   : > { %609 = vperm.xlu1 (!%p962_p2), %1154, %v579_v12  }
  0x7a   : > { %996 = vmatpush3.bf16.msra.mxu0 %v1149_v13  ;;  %1031 = vmatpush3.bf16.msra.mxu1 %v1149_v13  ;;  %v577_v13 = vld [vmem:[%s1516_s27 + $0x8] sm:$0xff] (!%p962_p2) }
  0x7b   : > { %997 = vmatprep.subr.bf16.mxu0 %v1150_v14  ;;  %1024 = vmatprep.subr.bf16.mxu1 %v1150_v14 }
  0x7c   : > { %599 = vperm.xlu0 (!%p962_p2), %1153, %v577_v13  }
  0x7e   : > { %998 = vmatpush3.bf16.msra.mxu0 %v1150_v14  ;;  %1032 = vmatpush3.bf16.msra.mxu1 %v1150_v14  ;;  %v581_v14 = vld [vmem:[%s1516_s27 + $0x28] sm:$0xff] (!%p962_p2) }
  0x7f   : > { %999 = vmatprep.subr.bf16.mxu0 %v1151_v15  ;;  %1025 = vmatprep.subr.bf16.mxu1 %v1151_v15 }
  0x80   : > { %619 = vperm.xlu1 (!%p962_p2), %1154, %v581_v14  }
  0x82   : > { %1000 = vmatpush3.bf16.msra.mxu0 %v1151_v15  ;;  %1033 = vmatpush3.bf16.msra.mxu1 %v1151_v15  ;;  %v580_v15 = vld [vmem:[%s1516_s27 + $0x20] sm:$0xff] (!%p962_p2) }
  0x83   : > { %1001 = vmatprep.subr.bf16.mxu0 %v1152_v16  ;;  %1026 = vmatprep.subr.bf16.mxu1 %v1152_v16 }
  0x84   : > { %614 = vperm.xlu0 (!%p962_p2), %1153, %v580_v15  }
  0x86   : > { %1002 = vmatpush3.bf16.msra.mxu0 %v1152_v16  ;;  %1034 = vmatpush3.bf16.msra.mxu1 %v1152_v16  ;;  %v583_v16 = vld [vmem:[%s1516_s27 + $0x38] sm:$0xff] (!%p962_p2) }
  0x87   : > { %629 = vperm.xlu1 (!%p962_p2), %1154, %v583_v16  }
  0x88   : > { %624 = vperm.xlu0 (!%p962_p2), %1153, %v582_v17  }
  0x89   : > { %1004 = vmatmul.mubr.bf16.vlgmr.msra.gmra.mrb[0].mxu0 %v335_v19  ;;  %1012 = vmatmul.mubr.bf16.vlgmr.msra.gmra.mrb[0].mxu1 %v339_v20  ;;  %v584_v19 = vld [vmem:[%s1516_s27 + $0x40] sm:$0xff] (!%p962_p2)  ;;  %v587_v20 = vld [vmem:[%s1516_s27 + $0x58] sm:$0xff] (!%p962_p2) }
  0x8a   : > { %1007 = vmatprep.mubr.bf16.mxu0 %v336_v21  ;;  %1015 = vmatprep.mubr.bf16.mxu1 %v340_v22  ;;  %v586_v21 = vld [vmem:[%s1516_s27 + $0x50] sm:$0xff] (!%p962_p2)  ;;  %v589_v22 = vld [vmem:[%s1516_s27 + $0x68] sm:$0xff] (!%p962_p2) }
  0x8b   : > { %639 = vperm.xlu1 (!%p962_p2), %1154, %v585_v18  }
  0x8c   : > { %634 = vperm.xlu0 (!%p962_p2), %1153, %v584_v19  }
  0x8f   : > { %649 = vperm.xlu1 (!%p962_p2), %1154, %v587_v20  }
  0x90   : > { %644 = vperm.xlu0 (!%p962_p2), %1153, %v586_v21  }
  0x91   : > { %1008 = vmatmul.mubr.bf16.gmra.mrb[4].mxu0 %v337_v23  ;;  %1016 = vmatmul.mubr.bf16.gmra.mrb[4].mxu1 %v341_v24  ;;  %v588_v23 = vld [vmem:[%s1516_s27 + $0x60] sm:$0xff] (!%p962_p2)  ;;  %v591_v24 = vld [vmem:[%s1516_s27 + $0x78] sm:$0xff] (!%p962_p2) }
  0x93   : > { %659 = vperm.xlu1 (!%p962_p2), %1154, %v589_v22  }
  0x94   : > { %654 = vperm.xlu0 (!%p962_p2), %1153, %v588_v23  }
  0x97   : > { %669 = vperm.xlu1 (!%p962_p2), %1154, %v591_v24  }
 0x15c   : > { %v1005_v29 = vpop.f32.mrb[0].mxu0  ;;  %v1013_v30 = vpop.f32.mrb[0].mxu1 }
 0x15d   : > { %v526_v33 = vadd.f32 %v1005_v29, %v365_v25  ;;  %v534_v34 = vadd.f32 %v1013_v30, %v373_v26  ;;  %v461_v35 = vpop.f32.mrb[1].mxu0  ;;  %v493_v36 = vpop.f32.mrb[1].mxu1  ;;  %v590_v25 = vld [vmem:[%s1516_s27 + $0x70] sm:$0xff] (!%p962_p2) }
 0x15e   : > { %v524_v39 = vadd.f32 %v461_v35, %v363_v27  ;;  %v532_v40 = vadd.f32 %v493_v36, %v371_v28  ;;  %v1006_v41 = vpop.f32.mrb[2].mxu0  ;;  %v1014_v42 = vpop.f32.mrb[2].mxu1  ;;  %664 = vperm.xlu0 (!%p962_p2), %1153, %v590_v25  }
 0x15f   : > { %542 = vst [vmem:[%s1518_s12 + $0x10] sm:$0xff] %v526_v33  ;;  %550 = vst [vmem:[%s1518_s12 + $0x50] sm:$0xff] %v534_v34  ;;  %v527_v43 = vadd.f32 %v1006_v41, %v366_v31  ;;  %v535_v44 = vadd.f32 %v1014_v42, %v374_v32  ;;  %v464_v45 = vpop.f32.mrb[3].mxu0  ;;  %v496_v46 = vpop.f32.mrb[3].mxu1 }
 0x160   : > { %540 = vst [vmem:[%s1518_s12] sm:$0xff] %v524_v39  ;;  %548 = vst [vmem:[%s1518_s12 + $0x40] sm:$0xff] %v532_v40  ;;  %v525_v47 = vadd.f32 %v464_v45, %v364_v37  ;;  %v533_v48 = vadd.f32 %v496_v46, %v372_v38  ;;  %v605_v28 = vpop.permute.xlu1 (!%p962_p2), %604  ;;  %v595_v29 = vpop.permute.xlu0 (!%p962_p2), %594 }
 0x161   : > { %543 = vst [vmem:[%s1518_s12 + $0x18] sm:$0xff] %v527_v43  ;;  %551 = vst [vmem:[%s1518_s12 + $0x58] sm:$0xff] %v535_v44 }
 0x162   : > { %541 = vst [vmem:[%s1518_s12 + $0x8] sm:$0xff] %v525_v47  ;;  %549 = vst [vmem:[%s1518_s12 + $0x48] sm:$0xff] %v533_v48 }
 0x164   : > { %v1009_v53 = vpop.f32.mrb[4].mxu0  ;;  %v1017_v54 = vpop.f32.mrb[4].mxu1  ;;  %559 = sbr.rel (%p962_p2) target bundleno = 499 (0x1f3), region = 82 }
 0x165   : > { %v530_v57 = vadd.f32 %v1009_v53, %v369_v49  ;;  %v538_v58 = vadd.f32 %v1017_v54, %v377_v50  ;;  %v477_v59 = vpop.f32.mrb[5].mxu0  ;;  %v509_v60 = vpop.f32.mrb[5].mxu1 }
 0x166   : > { %v528_v63 = vadd.f32 %v477_v59, %v367_v51  ;;  %v536_v0 = vadd.f32 %v509_v60, %v375_v52  ;;  %v1010_v1 = vpop.f32.mrb[6].mxu0  ;;  %v1018_v2 = vpop.f32.mrb[6].mxu1  ;;  %v562_v26 = vld [vmem:[%s1518_s12 + $0x10] sm:$0xff] (!%p962_p2) }
 0x167   : > { %546 = vst [vmem:[%s1518_s12 + $0x30] sm:$0xff] %v530_v57  ;;  %554 = vst [vmem:[%s1518_s12 + $0x70] sm:$0xff] %v538_v58  ;;  %v531_v3 = vadd.f32 %v1010_v1, %v370_v55  ;;  %v539_v4 = vadd.f32 %v1018_v2, %v378_v56  ;;  %v480_v5 = vpop.f32.mrb[7].mxu0  ;;  %v512_v6 = vpop.f32.mrb[7].mxu1  ;;  %v560_v27 = vld [vmem:[%s1518_s12] sm:$0xff] (!%p962_p2)  ;;  %v674_v30 = vmul.f32 (!%p962_p2), %v605_v28, %v562_v26  ;;  %v570_v11 = vld [vmem:[%s1518_s12 + $0x50] sm:$0xff] (!%p962_p2) }
 0x168   : > { %544 = vst [vmem:[%s1518_s12 + $0x20] sm:$0xff] %v528_v63  ;;  %552 = vst [vmem:[%s1518_s12 + $0x60] sm:$0xff] %v536_v0  ;;  %v529_v7 = vadd.f32 %v480_v5, %v368_v61  ;;  %v537_v8 = vadd.f32 %v512_v6, %v376_v62  ;;  %v672_v31 = vmul.f32 (!%p962_p2), %v595_v29, %v560_v27  ;;  %v563_v32 = vld [vmem:[%s1518_s12 + $0x18] sm:$0xff] (!%p962_p2)  ;;  %v610_v34 = vpop.permute.xlu1 (!%p962_p2), %609  ;;  %v600_v35 = vpop.permute.xlu0 (!%p962_p2), %599  ;;  %v568_v63 = vld [vmem:[%s1518_s12 + $0x40] sm:$0xff] (!%p962_p2) }
 0x169   : > { %547 = vst [vmem:[%s1518_s12 + $0x38] sm:$0xff] %v531_v3  ;;  %555 = vst [vmem:[%s1518_s12 + $0x78] sm:$0xff] %v539_v4  ;;  %v561_v33 = vld [vmem:[%s1518_s12 + $0x8] sm:$0xff] (!%p962_p2)  ;;  %v675_v36 = vmul.f32 (!%p962_p2), %v610_v34, %v563_v32  ;;  %v728_v43 = vmul.f32 (!%p962_p2), %v674_v30, %v674_v30  ;;  %v571_v10 = vld [vmem:[%s1518_s12 + $0x58] sm:$0xff] (!%p962_p2) }
 0x16a   : > { %545 = vst [vmem:[%s1518_s12 + $0x28] sm:$0xff] %v529_v7  ;;  %553 = vst [vmem:[%s1518_s12 + $0x68] sm:$0xff] %v537_v8  ;;  %v673_v37 = vmul.f32 (!%p962_p2), %v600_v35, %v561_v33  ;;  %v726_v40 = vmul.f32 (!%p962_p2), %v672_v31, %v672_v31  ;;  %v569_v62 = vld [vmem:[%s1518_s12 + $0x48] sm:$0xff] (!%p962_p2) }
 0x16b   : > { %690 = vst [vmem:[%s1518_s12 + $0x10] sm:$0xff] %v674_v30  ;;  %688 = vst [vmem:[%s1518_s12] sm:$0xff] %v672_v31  ;;  %v729_v52 = vmul.f32 %v675_v36, %v675_v36 }
 0x16c   : > { %691 = vst [vmem:[%s1518_s12 + $0x18] sm:$0xff] %v675_v36  ;;  %689 = vst [vmem:[%s1518_s12 + $0x8] sm:$0xff] %v673_v37  ;;  %v704_v41 = vadd.f32 %v673_v37, %v672_v31  ;;  %v727_v42 = vmul.f32 %v673_v37, %v673_v37  ;;  %v620_v44 = vpop.permute.xlu1 %619  ;;  %v615_v45 = vpop.permute.xlu0 %614 }
 0x16e   : > { %v705_v46 = vadd.f32 %v704_v41, %v674_v30  ;;  %v742_v47 = vadd.f32 %v727_v42, %v726_v40  ;;  %v566_v51 = vld [vmem:[%s1518_s12 + $0x30] sm:$0xff] }
 0x16f   : > { %v564_v39 = vld [vmem:[%s1518_s12 + $0x20] sm:$0xff]  ;;  %v574_v35 = vld [vmem:[%s1518_s12 + $0x70] sm:$0xff] }
 0x170   : > { %v676_v49 = vmul.f32 %v615_v45, %v564_v39  ;;  %v567_v50 = vld [vmem:[%s1518_s12 + $0x38] sm:$0xff]  ;;  %v743_v53 = vadd.f32 %v742_v47, %v728_v43  ;;  %v706_v54 = vadd.f32 %v705_v46, %v675_v36  ;;  %v630_v56 = vpop.permute.xlu1 %629  ;;  %v625_v57 = vpop.permute.xlu0 %624  ;;  %v572_v23 = vld [vmem:[%s1518_s12 + $0x60] sm:$0xff] }
 0x171   : > { %v565_v38 = vld [vmem:[%s1518_s12 + $0x28] sm:$0xff]  ;;  %v679_v60 = vmul.f32 %v630_v56, %v567_v50  ;;  %v678_v61 = vmul.f32 %v625_v57, %v566_v51  ;;  %v575_v34 = vld [vmem:[%s1518_s12 + $0x78] sm:$0xff] }
 0x172   : > { %v677_v48 = vmul.f32 %v620_v44, %v565_v38  ;;  %692 = vst [vmem:[%s1518_s12 + $0x20] sm:$0xff] %v676_v49  ;;  %v730_v55 = vmul.f32 %v676_v49, %v676_v49  ;;  %v707_v58 = vadd.f32 %v706_v54, %v676_v49  ;;  %v744_v59 = vadd.f32 %v743_v53, %v729_v52  ;;  %v573_v22 = vld [vmem:[%s1518_s12 + $0x68] sm:$0xff] }
 0x173   : > { %695 = vst [vmem:[%s1518_s12 + $0x38] sm:$0xff] %v679_v60  ;;  %694 = vst [vmem:[%s1518_s12 + $0x30] sm:$0xff] %v678_v61  ;;  %v732_v3 = vmul.f32 %v678_v61, %v678_v61  ;;  %v733_v12 = vmul.f32 %v679_v60, %v679_v60 }
 0x174   : > { %693 = vst [vmem:[%s1518_s12 + $0x28] sm:$0xff] %v677_v48  ;;  %v731_v0 = vmul.f32 %v677_v48, %v677_v48  ;;  %v745_v1 = vadd.f32 %v744_v59, %v730_v55  ;;  %v708_v2 = vadd.f32 %v707_v58, %v677_v48  ;;  %v640_v4 = vpop.permute.xlu1 %639  ;;  %v635_v5 = vpop.permute.xlu0 %634 }
 0x175   : > { %v681_v8 = vmul.f32 %v640_v4, %v569_v62  ;;  %v680_v9 = vmul.f32 %v635_v5, %v568_v63 }
 0x176   : > { %v709_v6 = vadd.f32 %v708_v2, %v678_v61  ;;  %v746_v7 = vadd.f32 %v745_v1, %v731_v0 }
 0x177   : > { %697 = vst [vmem:[%s1518_s12 + $0x48] sm:$0xff] %v681_v8  ;;  %696 = vst [vmem:[%s1518_s12 + $0x40] sm:$0xff] %v680_v9  ;;  %v734_v15 = vmul.f32 %v680_v9, %v680_v9  ;;  %v735_v24 = vmul.f32 %v681_v8, %v681_v8 }
 0x178   : > { %v747_v13 = vadd.f32 %v746_v7, %v732_v3  ;;  %v710_v14 = vadd.f32 %v709_v6, %v679_v60  ;;  %v650_v16 = vpop.permute.xlu1 %649  ;;  %v645_v17 = vpop.permute.xlu0 %644 }
 0x179   : > { %v683_v20 = vmul.f32 %v650_v16, %v571_v10  ;;  %v682_v21 = vmul.f32 %v645_v17, %v570_v11 }
 0x17a   : > { %v711_v18 = vadd.f32 %v710_v14, %v680_v9  ;;  %v748_v19 = vadd.f32 %v747_v13, %v733_v12 }
 0x17b   : > { %699 = vst [vmem:[%s1518_s12 + $0x58] sm:$0xff] %v683_v20  ;;  %698 = vst [vmem:[%s1518_s12 + $0x50] sm:$0xff] %v682_v21  ;;  %v736_v27 = vmul.f32 %v682_v21, %v682_v21  ;;  %v737_v36 = vmul.f32 %v683_v20, %v683_v20 }
 0x17c   : > { %v749_v25 = vadd.f32 %v748_v19, %v734_v15  ;;  %v712_v26 = vadd.f32 %v711_v18, %v681_v8  ;;  %v660_v28 = vpop.permute.xlu1 %659  ;;  %v655_v29 = vpop.permute.xlu0 %654 }
 0x17d   : > { %v685_v32 = vmul.f32 %v660_v28, %v573_v22  ;;  %v684_v33 = vmul.f32 %v655_v29, %v572_v23 }
 0x17e   : > { %v713_v30 = vadd.f32 %v712_v26, %v682_v21  ;;  %v750_v31 = vadd.f32 %v749_v25, %v735_v24 }
 0x17f   : > { %701 = vst [vmem:[%s1518_s12 + $0x68] sm:$0xff] %v685_v32  ;;  %700 = vst [vmem:[%s1518_s12 + $0x60] sm:$0xff] %v684_v33  ;;  %v738_v39 = vmul.f32 %v684_v33, %v684_v33  ;;  %v739_v46 = vmul.f32 %v685_v32, %v685_v32 }
 0x180   : > { %v751_v37 = vadd.f32 %v750_v31, %v736_v27  ;;  %v714_v38 = vadd.f32 %v713_v30, %v683_v20  ;;  %v670_v40 = vpop.permute.xlu1 %669 }
 0x181   : > { %v687_v44 = vmul.f32 %v670_v40, %v575_v34 }
 0x182   : > { %v715_v42 = vadd.f32 %v714_v38, %v684_v33  ;;  %v752_v43 = vadd.f32 %v751_v37, %v737_v36 }
 0x183   : > { %703 = vst [vmem:[%s1518_s12 + $0x78] sm:$0xff] %v687_v44  ;;  %v741_v52 = vmul.f32 %v687_v44, %v687_v44 }
 0x184   : > { %v753_v47 = vadd.f32 %v752_v43, %v738_v39  ;;  %v716_v48 = vadd.f32 %v715_v42, %v685_v32 }
 0x186   : > { %v754_v51 = vadd.f32 %v753_v47, %v739_v46 }
 0x1dd   : > { %v665_v41 = vpop.permute.xlu0 %664 }
 0x1de   : > { %v686_v45 = vmul.f32 %v665_v41, %v574_v35 }
 0x1e0   : > { %702 = vst [vmem:[%s1518_s12 + $0x70] sm:$0xff] %v686_v45  ;;  %v717_v49 = vadd.f32 %v716_v48, %v686_v45  ;;  %v740_v50 = vmul.f32 %v686_v45, %v686_v45 }
 0x1e2   : > { %v718_v53 = vadd.f32 %v717_v49, %v687_v44  ;;  %v755_v54 = vadd.f32 %v754_v51, %v740_v50 }
 0x1e4   : > { %v719_v55 = vrot.slane %v718_v53, 4  ;;  %v756_v56 = vadd.f32 %v755_v54, %v741_v52 }
 0x1e6   : > { %v720_v57 = vadd.f32 %v719_v55, %v718_v53  ;;  %v757_v58 = vrot.slane %v756_v56, 4 }
 0x1e8   : > { %v721_v59 = vrot.slane %v720_v57, 2  ;;  %v758_v60 = vadd.f32 %v757_v58, %v756_v56 }
 0x1ea   : > { %v722_v61 = vadd.f32 %v721_v59, %v720_v57  ;;  %v759_v62 = vrot.slane %v758_v60, 2 }
 0x1ec   : > { %v723_v63 = vrot.slane %v722_v61, 1  ;;  %v760_v0 = vadd.f32 %v759_v62, %v758_v60 }
 0x1ee   : > { %v724_v1 = vadd.f32 %v723_v63, %v722_v61  ;;  %v761_v2 = vrot.slane %v760_v0, 1 }
 0x1f0   : > { %725 = vst [vmem:[%s1520_s13] sm:$0x1] %v724_v1  ;;  %v762_v3 = vadd.f32 %v761_v2, %v760_v0 }
 0x1f2   : > { %763 = vst [vmem:[%s1520_s13 + $0x1] sm:$0x1] %v762_v3 }
 0x1f3 PF: > { %s970_s20 = sshll.u32 %s1317_s21, 11  ;;  %s783_s11 = sshll.u32 %s1518_s12, 4  ;;  %s1644_s11 = int_to_ptr.vmem [resolvable:$true] %s783_s11 }
 0x1f4   : > { %s1641_s17 = scalar_lea.hbm %s1732_s3, %s970_s20  ;;  %s765_s14 = scalar_lea.sflag [#allocation5], %s1508_s10 }
 0x1f5   : > { %s1183_s25 = scalar_lea.vmem %s1644_s11, 2048  ;;  %p1757_p8 = scmp.ne.s32.totalorder %s1746_s7, 0 }
 0x1f6   : > { %p1184_p5 = scmp.ne.s32.totalorder %s1644_s11, %s1183_s25  ;;  %s1336_s18 = smov [#allocation6]  }
 0x1f7   : > { %s1187_s6 = sshll.u32 %s1336_s18, 4  ;;  %s1188_s6 = int_to_ptr.vmem [resolvable:$false] %s1187_s6 }
 0x1f8   : > { %p1185_p10 = pnand %p1184_p5, %p1757_p8  ;;  %s1189_s9 = scalar_lea.vmem %s1188_s6, 4096 }
 0x1f9   : > { %p1190_p13 = scmp.lt.s32.totalorder %s1644_s11, %s1188_s6  ;;  %p1191_p0 = scmp.lt.s32.totalorder %s1189_s9, %s1183_s25 }
 0x1fa   : > { %p1186_p11 = pneg %p1185_p10 }
 0x1fb   : > { %p1192_p4 = por %p1191_p0, %p1190_p13 }
 0x1fd   : > { %p1193_p6 = pnand %p1192_p4, %p1186_p11 }
 0x1ff   : > { %1196 = shalt.err (!%p1193_p6)
}
 0x200   : > { %s1197_s27 = scalar_lea.hbm %s1641_s17, 2048  ;;  %s1201_s26 = scalar_lea.hbm %s1732_s3, 6144 }
 0x201   : > { %p1198_p9 = scmp.ne.s32.totalorder %s1641_s17, %s1197_s27  ;;  %p1202_p12 = scmp.lt.u32.totalorder %s1641_s17, %s1732_s3 }
 0x202   : > { %p1203_p1 = scmp.lt.u32.totalorder %s1201_s26, %s1197_s27  ;;  %p1205_p5 = scmp.lt.u32.totalorder %s1197_s27, %s1641_s17 }
 0x203   : > { %p1199_p3 = pnand %p1198_p9, %p1757_p8 }
 0x204   : > { %p1204_p2 = por %p1203_p1, %p1202_p12 }
 0x205   : > { %p1200_p7 = pneg %p1199_p3 }
 0x206   : > { %p1206_p10 = por %p1205_p5, %p1204_p2 }
 0x208   : > { %p1207_p11 = pnand %p1206_p10, %p1200_p7 }
 0x20a   : > { %1210 = shalt.err (!%p1207_p11)
}
 0x20b   : > { %s1337_s20 = smov 128   ;;  %s1338_s5 = smov 8  }
 0x20c   : > { %1040 = dma.vmem_to_hbm [thread:$0]  (%p1757_p8), %s1644_s11, 2048, %s1641_s17, %s765_s14, %s1337_s20, %s1337_s20, %s1338_s5  }
 0x20d   : > { %s967_s28 = sshll.u32 %s1317_s21, 7  ;;  %s799_s25 = sshll.u32 %s1520_s13, 4  ;;  %s800_s25 = int_to_ptr.vmem [resolvable:$true] %s799_s25 }
 0x20e   : > { %s1675_s9 = scalar_lea.hbm %s1733_s4, %s967_s28  ;;  %s770_s27 = scalar_lea.sflag [#allocation8], %s1508_s10 }
 0x20f   : > { %s1211_s12 = scalar_lea.vmem %s800_s25, 128  ;;  %s1339_s8 = smov [#allocation7]  }
 0x210   : > { %p1212_p13 = scmp.ne.s32.totalorder %s800_s25, %s1211_s12  ;;  %s1215_s26 = sshll.u32 %s1339_s8, 4  ;;  %s1216_s26 = int_to_ptr.vmem [resolvable:$false] %s1215_s26 }
 0x211   : > { %s1217_s29 = scalar_lea.vmem %s1216_s26, 256  ;;  %p1218_p6 = scmp.lt.s32.totalorder %s800_s25, %s1216_s26 }
 0x212   : > { %p1213_p0 = pnand %p1212_p13, %p1757_p8  ;;  %p1219_p9 = scmp.lt.s32.totalorder %s1217_s29, %s1211_s12 }
 0x214   : > { %p1214_p4 = pneg %p1213_p0  ;;  %p1220_p3 = por %p1219_p9, %p1218_p6 }
 0x216   : > { %p1221_p7 = pnand %p1220_p3, %p1214_p4 }
 0x218   : > { %1224 = shalt.err (!%p1221_p7)
}
 0x219   : > { %s1225_s21 = scalar_lea.hbm %s1675_s9, 128  ;;  %s1229_s17 = scalar_lea.hbm %s1733_s4, 384 }
 0x21a   : > { %p1226_p12 = scmp.ne.s32.totalorder %s1675_s9, %s1225_s21  ;;  %p1230_p5 = scmp.lt.u32.totalorder %s1675_s9, %s1733_s4 }
 0x21b   : > { %p1231_p10 = scmp.lt.u32.totalorder %s1229_s17, %s1225_s21  ;;  %p1233_p13 = scmp.lt.u32.totalorder %s1225_s21, %s1675_s9 }
 0x21c   : > { %p1227_p1 = pnand %p1226_p12, %p1757_p8 }
 0x21d   : > { %p1232_p11 = por %p1231_p10, %p1230_p5 }
 0x21e   : > { %p1228_p2 = pneg %p1227_p1 }
 0x21f   : > { %p1234_p0 = por %p1233_p13, %p1232_p11 }
 0x221   : > { %p1235_p4 = pnand %p1234_p0, %p1228_p2 }
 0x223   : > { %1238 = shalt.err (!%p1235_p4)
}
 0x224   : > { %1041 = dma.vmem_to_hbm [thread:$0]  (%p1757_p8), %s800_s25, 128, %s1675_s9, %s770_s27  }
 0x225 PF: > { %s1758_s30 = sld [smem:[#allocation15_spill]]  ;;  %p1057_p6 = scmp.ge.s32.totalorder %s1329_s24, 2 }
 0x226   : > { %s811_s20 = sand.u32 1, %s1293_s15  }
 0x227   : > { %s812_s5 = scalar_lea.sflag [#allocation5], %s811_s20 }
 0x22b   : > { %p1759_p9 = scmp.ne.s32.totalorder %s1758_s30, 0 }
 0x22d   : > { %p1049_p3 = pnand %p1057_p6, %p1759_p9 }
 0x22f   : > { %1284 = dma.done.wait (!%p1049_p3), %s812_s5, 2048  }
 0x230   : > { %1286 = vsyncadd (!%p1049_p3), %s812_s5, 4294965248  ;;  %s821_s28 = scalar_lea.sflag [#allocation8], %s811_s20 }
 0x231   : > { %1288 = dma.done.wait (!%p1049_p3), %s821_s28, 128  }
 0x232   : > { %1290 = vsyncadd (!%p1049_p3), %s821_s28, 4294967168  ;;  %s22_s24 = sadd.s32 1, %s1329_s24   ;;  %s1760_s7 = sld [smem:[#allocation12_spill]] }
 0x233   : > { %p19_p7 = scmp.ge.s32.totalorder %s22_s24, 11   ;;  %s1761_s17 = sld [smem:[#allocation16_spill]] }
 0x234   : > { %s1762_s25 = sld [smem:[#allocation17_spill]]  ;;  %s1763_s6 = sld [smem:[#allocation13_spill]] }
 0x235   : > { %s1764_s9 = sld [smem:[#allocation14_spill]]  ;;  %s1765_s15 = smov %s1297_s16 }
 0x236   : > { %s1767_s18 = smov %s1309_s19  ;;  %s1769_s20 = smov %s1321_s22 }
 0x237   : > { %s1770_s21 = smov %s1325_s23  ;;  %21 = sbr.rel (!%p19_p7) target bundleno = 9 (0x9), region = 144 }
 0x238   : > { %s1766_s16 = smov %s1760_s7 }
 0x23a   : > { %s1768_s19 = smov %s1762_s25  ;;  %s1771_s22 = smov %s1763_s6 }
 0x23b   : > { %s1772_s23 = smov %s1764_s9 }
 0x23e   :  { %826 = vsyncpa [#allocation4], 1 }
 0x23f   :  { %828 = vsyncpa [#allocation4 + $0x1], 1 }
 0x240   :  { %829 = vsyncpa [#allocation5], 1 }
 0x241   :  { %831 = vsyncpa [#allocation5 + $0x1], 1 }
 0x242   :  { %832 = vsyncpa [#allocation8], 1 }
 0x243   :  { %834 = vsyncpa [#allocation8 + $0x1], 1 }

// kernel: tpu_custom_call.1
= control target key start
LH: loop header
LB: loop body
LE: loop exit
PB: predicated region body
PF: predicated region fallthrough
CT: control target
= control target key end

     0   :  { %s1782_s0 = inlined_call_operand.hbm [shape: bf16[384,384], index: 0, kind: input, shape index: {}]   ;;  %s1783_s1 = inlined_call_operand.vmem [shape: bf16[384,128], index: 1, kind: input, shape index: {}]   ;;  %s1784_s2 = inlined_call_operand.vmem [shape: f32[384,1], index: 2, kind: input, shape index: {}]   ;;  %s1785_s3 = inlined_call_operand.hbm [shape: f32[384,128], index: 3, kind: output, shape index: {0}]   ;;  %s1786_s4 = inlined_call_operand.hbm [shape: f32[24,128], index: 4, kind: output, shape index: {1}]  }
   0x1   :  { %1790 = sst [smem:[#allocation14_spill]] %s1782_s0 }
   0x2   :  { %1791 = sst [smem:[#allocation15_spill]] %s1783_s1 }
   0x3   :  { %1792 = sst [smem:[#allocation16_spill]] %s1784_s2 }
   0x4   :  { %10 = vsyncpa [#allocation3], 0 }
   0x5   :  { %12 = vsyncpa [#allocation3 + $0x1], 0 }
   0x6   :  { %13 = vsyncpa [#allocation4], 0 }
   0x7   :  { %15 = vsyncpa [#allocation4 + $0x1], 0 }
   0x8   :  { %16 = vsyncpa [#allocation7], 0 }
   0x9   :  { %18 = vsyncpa [#allocation7 + $0x1], 0  ;;  %s1398_s15 = smov 0   ;;  %s1400_s16 = smov 0  }
   0xa   :  { %s1402_s17 = smov 0   ;;  %s1404_s18 = smov 0  }
   0xb   :  { %s1406_s19 = smov 0   ;;  %s1408_s20 = smov 0  }
   0xc   :  { %s1410_s21 = smov 0   ;;  %s1412_s22 = smov 0  }
   0xd   :  { %s1414_s23 = smov 0   ;;  %s1416_s24 = smov 0  }
   0xe   :  { %s1418_s25 = smov 0  }
   0xf LB: > { %s938_s26 = sadd.s32 4294967295, %s1361_s25   ;;  %s939_s27 = sadd.s32 4294967294, %s1361_s25   ;;  %s1361_s25 = sphi %s1418_s25, %s24_s25   ;;  %s1357_s24 = sphi %s1416_s24, %s1818_s24   ;;  %s1353_s23 = sphi %s1414_s23, %s1817_s23   ;;  %s1349_s22 = sphi %s1412_s22, %s1816_s22   ;;  %s1345_s21 = sphi %s1410_s21, %s1815_s21   ;;  %s1341_s20 = sphi %s1408_s20, %s1814_s20   ;;  %s1337_s19 = sphi %s1406_s19, %s1813_s19   ;;  %s1333_s18 = sphi %s1404_s18, %s1812_s18   ;;  %s1329_s17 = sphi %s1402_s17, %s1811_s17   ;;  %s1325_s16 = sphi %s1400_s16, %s1810_s16   ;;  %s1321_s15 = sphi %s1398_s15, %s1809_s15  }
  0x10   : > { %s33_s28 = sadd.s32 1, %s1353_s23  ;;  %s36_s29 = sadd.s32 1, %s1357_s24 }
  0x11   : > { %p34_p0 = scmp.ge.s32.totalorder %s33_s28, 3  ;;  %s45_s30 = sadd.s32 1, %s1341_s20 }
  0x12   : > { %p52_p1 = scmp.ne.s32.totalorder %s1341_s20, %s1337_s19  ;;  %p53_p2 = scmp.eq.s32.totalorder %s1361_s25, 0 }
  0x13   : > { %s1820_s28 = smov (%p34_p0, %s33_s28), 0  ;;  %s1822_s29 = smov (!%p34_p0, %s36_s29), %s1357_s24 }
  0x14   : > { %1793 = sst [smem:[#allocation11_spill]] %s1820_s28  ;;  %s41_s5 = ssub.s32 %s1353_s23, %s1820_s28 }
  0x15   : > { %p1464_p3 = por %p53_p2, %p52_p1  ;;  %p38_p4 = scmp.ge.s32.totalorder %s1822_s29, 3 }
  0x16   : > { %p58_p5 = scmp.ne.s32.totalorder %s1337_s19, %s1333_s18  ;;  %p59_p6 = scmp.eq.s32.totalorder %s938_s26, 0 }
  0x17   : > { %s118_s7 = sadd.s32 1, %s1329_s17  ;;  %s1824_s29 = smov (%p38_p4, %s1822_s29), 0 }
  0x18   : > { %1795 = sst [smem:[#allocation12_spill]] %s1824_s29  ;;  %p1472_p7 = por %p59_p6, %p58_p5 }
  0x19   : > { %p128_p8 = scmp.ne.s32.totalorder %s1329_s17, %s1325_s16  ;;  %s40_s9 = ssub.s32 %s1357_s24, %s1824_s29 }
  0x1a   : > { %p129_p9 = scmp.eq.s32.totalorder %s938_s26, 8  ;;  %s42_s10 = sor.u32 %s41_s5, %s40_s9 }
  0x1b   : > { %p116_p10 = scmp.eq.s32.totalorder %s40_s9, 0  ;;  %p43_p11 = scmp.eq.s32.totalorder %s42_s10, 0 }
  0x1c   : > { %p1480_p12 = por %p129_p9, %p128_p8  ;;  %p134_p13 = scmp.ne.s32.totalorder %s1325_s16, %s1321_s15 }
  0x1d   : > { %s1485_s12 = scalar_select %p116_p10, %s1329_s17, %s118_s7  }
  0x1e   : > { %s1797_s11 = scalar_select %p1480_p12, 1, 0 }
  0x1f   : > { %s1488_s13 = scalar_select %p43_p11, %s1341_s20, %s45_s30  }
  0x20   : > { %p135_p0 = scmp.eq.s32.totalorder %s939_s27, 8  ;;  %p1062_p1 = scmp.lt.s32.totalorder %s1361_s25, 9 }
  0x21   : > { %1798 = sst [smem:[#allocation13_spill]] %s1488_s13  ;;  %s184_s18 = sand.u32 1, %s1341_s20  }
  0x22   : > { %p1493_p2 = por %p135_p0, %p134_p13  ;;  %s942_s26 = sshll.u32 %s184_s18, 6 }
  0x23   : > { %s1044_s5 = smul.u32 48, %s1357_s24  ;;  %s188_s9 = scalar_lea.vmem [#allocation2], %s942_s26 }
  0x24   : > { %s1799_s14 = scalar_select %p1493_p2, 1, 0 }
  0x25   : > { %s197_s10 = sshll.u32 %s188_s9, 4  ;;  %p1501_p4 = pnand %p1062_p1, %p1464_p3  ;;  %s1506_s10 = int_to_ptr.vmem [resolvable:$true] %s197_s10 }
  0x26   : > { %s194_s30 = sadd.s32 %s1353_s23, %s1044_s5  ;;  %s1801_s0 = sld [smem:[#allocation14_spill]] }
  0x27   : > { %s945_s27 = sshll.u32 %s194_s30, 6  ;;  %s1513_s6 = scalar_lea.sflag [#allocation3], %s184_s18 }
  0x28   : > { %p1179_p5 = pneg %p1501_p4 }
  0x2c   : > { %s1511_s13 = scalar_lea.hbm %s1801_s0, %s945_s27  ;;  %s1182_s28 = scalar_lea.hbm %s1801_s0, 9216 }
  0x2d   : > { %s1177_s26 = scalar_lea.hbm %s1511_s13, 1024  ;;  %p1183_p9 = scmp.lt.u32.totalorder %s1511_s13, %s1801_s0 }
  0x2e   : > { %p1178_p3 = scmp.ne.s32.totalorder %s1511_s13, %s1177_s26  ;;  %p1184_p10 = scmp.lt.u32.totalorder %s1182_s28, %s1177_s26 }
  0x2f   : > { %p1186_p13 = scmp.lt.u32.totalorder %s1177_s26, %s1511_s13 }
  0x30   : > { %p1180_p6 = pnand %p1179_p5, %p1178_p3  ;;  %p1185_p11 = por %p1184_p10, %p1183_p9 }
  0x32   : > { %p1181_p8 = pneg %p1180_p6  ;;  %p1187_p0 = por %p1186_p13, %p1185_p11 }
  0x34   : > { %p1188_p1 = pnand %p1187_p0, %p1181_p8 }
  0x36   : > { %1191 = shalt.err (!%p1188_p1)
}
  0x37   : > { %s1192_s18 = scalar_lea.vmem %s1506_s10, 1024  ;;  %s1363_s7 = smov [#allocation2]  }
  0x38   : > { %p1193_p3 = scmp.ne.s32.totalorder %s1506_s10, %s1192_s18  ;;  %s1197_s5 = sshll.u32 %s1363_s7, 4  ;;  %s1198_s5 = int_to_ptr.vmem [resolvable:$false] %s1197_s5 }
  0x39   : > { %s1199_s9 = scalar_lea.vmem %s1198_s5, 2048  ;;  %p1200_p12 = scmp.lt.s32.totalorder %s1506_s10, %s1198_s5 }
  0x3a   : > { %p1195_p6 = pnand %p1193_p3, %p1179_p5  ;;  %p1201_p9 = scmp.lt.s32.totalorder %s1199_s9, %s1192_s18 }
  0x3c   : > { %p1196_p2 = pneg %p1195_p6  ;;  %p1202_p10 = por %p1201_p9, %p1200_p12 }
  0x3e   : > { %p1203_p11 = pnand %p1202_p10, %p1196_p2 }
  0x40   : > { %1206 = shalt.err (!%p1203_p11)
}
  0x41   : > { %s1364_s26 = smov 192   ;;  %s1365_s28 = smov 64  }
  0x42   : > { %s1366_s30 = smov 4   ;;  %p946_p5 = scmp.ge.s32.totalorder %s1361_s25, 1 }
  0x43   : > { %1054 = dma.hbm_to_vmem [thread:$0]  (!%p1501_p4), %s1511_s13, 1024, %s1506_s10, %s1513_s6, %s1364_s26, %s1365_s28, %s1366_s30  }
  0x44   : > { %p214_p8 = scmp.lt.s32.totalorder %s1361_s25, 10 }
  0x46   : > { %p215_p13 = pnand %p946_p5, %p214_p8 }
  0x47   : > { %s220_s27 = sand.u32 (!%p215_p13), 1, %s1337_s19  }
  0x48   : > { %218 = sbr.rel (%p215_p13) target bundleno = 546 (0x222), region = 32  ;;  %s947_s18 = sshll.u32 (!%p215_p13), %s220_s27, 6 }
  0x49   : > { %s221_s7 = scalar_lea.sflag (!%p215_p13), [#allocation3], %s220_s27  ;;  %s1544_s5 = scalar_lea.vmem (!%p215_p13), [#allocation2], %s947_s18 }
  0x4f   : > { %1308 = dma.done.wait (%p1472_p7), %s221_s7, 1024  }
  0x50   : > { %1310 = vsyncadd (%p1472_p7), %s221_s7, 4294966272  ;;  %s1551_s29 = sand.u32 1, %s1325_s16   ;;  %s950_s13 = sshll.u32 %s1349_s22, 4 }
  0x51   : > { %s948_s10 = sshll.u32 %s1551_s29, 7  ;;  %s949_s6 = sshll.u32 %s1551_s29, 3 }
  0x52   : > { %p261_p12 = scmp.lt.s32.totalorder %s950_s13, 47  ;;  %s1802_s2 = sld [smem:[#allocation16_spill]] }
  0x53   : > { %s1561_s27 = scalar_lea.vmem [#allocation5], %s948_s10  ;;  %s1563_s8 = scalar_lea.vmem [#allocation6], %s949_s6 }
  0x54   : > { %s1826_s13 = smov (!%p261_p12, %s950_s13), 47  ;;  %p952_p7 = scmp.ne.s32.totalorder %s1345_s21, 0 }
  0x55   : > { %s951_s9 = sshll.u32 %s1826_s13, 3  ;;  %v1367_v0 = vmov (!%p952_p7), 0.0  }
  0x56   : > { %271 = sbr.rel (%p952_p7) target bundleno = 94 (0x5e), region = 40  ;;  %272 = vst [vmem:[%s1561_s27] sm:$0xff] (!%p952_p7), %v1367_v0  ;;  %273 = vst [vmem:[%s1561_s27 + $0x8] sm:$0xff] (!%p952_p7), %v1367_v0 }
  0x57   : > { %274 = vst [vmem:[%s1561_s27 + $0x10] sm:$0xff] (!%p952_p7), %v1367_v0  ;;  %275 = vst [vmem:[%s1561_s27 + $0x18] sm:$0xff] (!%p952_p7), %v1367_v0 }
  0x58   : > { %s1559_s30 = scalar_lea.vmem %s1802_s2, %s951_s9  ;;  %276 = vst [vmem:[%s1561_s27 + $0x20] sm:$0xff] (!%p952_p7), %v1367_v0  ;;  %277 = vst [vmem:[%s1561_s27 + $0x28] sm:$0xff] (!%p952_p7), %v1367_v0 }
  0x59   : > { %278 = vst [vmem:[%s1561_s27 + $0x30] sm:$0xff] (!%p952_p7), %v1367_v0  ;;  %279 = vst [vmem:[%s1561_s27 + $0x38] sm:$0xff] (!%p952_p7), %v1367_v0 }
  0x5a   : > { %280 = vst [vmem:[%s1561_s27 + $0x40] sm:$0xff] (!%p952_p7), %v1367_v0  ;;  %281 = vst [vmem:[%s1561_s27 + $0x48] sm:$0xff] (!%p952_p7), %v1367_v0 }
  0x5b   : > { %282 = vst [vmem:[%s1561_s27 + $0x50] sm:$0xff] (!%p952_p7), %v1367_v0  ;;  %283 = vst [vmem:[%s1561_s27 + $0x58] sm:$0xff] (!%p952_p7), %v1367_v0 }
  0x5c   : > { %284 = vst [vmem:[%s1561_s27 + $0x60] sm:$0xff] (!%p952_p7), %v1367_v0  ;;  %285 = vst [vmem:[%s1561_s27 + $0x68] sm:$0xff] (!%p952_p7), %v1367_v0 }
  0x5d   : > { %286 = vst [vmem:[%s1561_s27 + $0x70] sm:$0xff] %v1367_v0  ;;  %287 = vst [vmem:[%s1561_s27 + $0x78] sm:$0xff] %v1367_v0 }
  0x5e PF: > { %s953_s18 = sshll.u32 %s1345_s21, 7  ;;  %v1167_v1 = vld [vmem:[%s1544_s5] sm:$0xff]   ;;  %s1803_s1 = sld [smem:[#allocation15_spill]]  ;;  %v1169_v11 = vld [vmem:[%s1544_s5 + $0x8] sm:$0xff]   ;;  %v1171_v13 = vld [vmem:[%s1544_s5 + $0x10] sm:$0xff]  }
  0x5f   : > { %s305_s7 = sshra.s32 %s953_s18, 3  ;;  %v1168_v2 = vld [vmem:[%s1544_s5 + $0x20] sm:$0xff]   ;;  %1012 = vmatprep.mubr.bf16.mxu0 %v1167_v1  ;;  %v1170_v12 = vld [vmem:[%s1544_s5 + $0x28] sm:$0xff]   ;;  %v1172_v14 = vld [vmem:[%s1544_s5 + $0x30] sm:$0xff]   ;;  %p971_p2 = scmp.ne.s32.totalorder %s1345_s21, 2 }
  0x60   : > { %s954_s13 = sshll.u32 %s305_s7, 2  ;;  %1020 = vmatprep.mubr.bf16.mxu1 %v1168_v2  ;;  %v1173_v15 = vld [vmem:[%s1544_s5 + $0x18] sm:$0xff]   ;;  %v327_v17 = vld [vmem:[%s1561_s27 + $0x10] sm:$0xff]  ;;  %v325_v19 = vld [vmem:[%s1561_s27] sm:$0xff] }
  0x61   : > { %v1174_v16 = vld [vmem:[%s1544_s5 + $0x38] sm:$0xff]   ;;  %v326_v29 = vld [vmem:[%s1561_s27 + $0x8] sm:$0xff]  ;;  %v331_v41 = vld [vmem:[%s1561_s27 + $0x30] sm:$0xff] }
  0x62   : > { %v333_v20 = vld [vmem:[%s1561_s27 + $0x40] sm:$0xff]  ;;  %v328_v23 = vld [vmem:[%s1561_s27 + $0x18] sm:$0xff]  ;;  %v334_v30 = vld [vmem:[%s1561_s27 + $0x48] sm:$0xff] }
  0x63   : > { %v335_v18 = vld [vmem:[%s1561_s27 + $0x50] sm:$0xff]  ;;  %v336_v24 = vld [vmem:[%s1561_s27 + $0x58] sm:$0xff]  ;;  %v329_v43 = vld [vmem:[%s1561_s27 + $0x20] sm:$0xff] }
  0x64   : > { %s1588_s9 = scalar_lea.vmem %s1803_s1, %s954_s13  ;;  %v339_v42 = vld [vmem:[%s1561_s27 + $0x70] sm:$0xff]  ;;  %v337_v44 = vld [vmem:[%s1561_s27 + $0x60] sm:$0xff]  ;;  %v332_v47 = vld [vmem:[%s1561_s27 + $0x38] sm:$0xff] }
  0x65   : > { %v1159_v3 = vld [vmem:[%s1588_s9] sm:$0xff]   ;;  %v1160_v4 = vld [vmem:[%s1588_s9 + $0x8] sm:$0xff]   ;;  %v1161_v5 = vld [vmem:[%s1588_s9 + $0x10] sm:$0xff]  }
  0x66   : > { %996 = vmatprep.subr.bf16.mxu0 %v1159_v3  ;;  %1028 = vmatprep.subr.bf16.mxu1 %v1159_v3  ;;  %v1162_v6 = vld [vmem:[%s1588_s9 + $0x18] sm:$0xff]   ;;  %v1163_v7 = vld [vmem:[%s1588_s9 + $0x20] sm:$0xff]   ;;  %v1164_v8 = vld [vmem:[%s1588_s9 + $0x28] sm:$0xff]  }
  0x67   : > { %997 = vmatpush3.bf16.msra.mxu0 %v1159_v3  ;;  %1036 = vmatpush3.bf16.msra.mxu1 %v1159_v3  ;;  %v1165_v9 = vld [vmem:[%s1588_s9 + $0x30] sm:$0xff]   ;;  %v1166_v10 = vld [vmem:[%s1588_s9 + $0x38] sm:$0xff]   ;;  %v330_v53 = vld [vmem:[%s1561_s27 + $0x28] sm:$0xff]  ;;  %v1368_v3 = vmov (!%p971_p2), 0  }
  0x68   : > { %998 = vmatprep.subr.bf16.mxu0 %v1160_v4  ;;  %1029 = vmatprep.subr.bf16.mxu1 %v1160_v4  ;;  %v340_v48 = vld [vmem:[%s1561_s27 + $0x78] sm:$0xff]  ;;  %v338_v54 = vld [vmem:[%s1561_s27 + $0x68] sm:$0xff]  ;;  %v588_v1 = vld [vmem:[%s1559_s30 + $0x10] sm:$0xff] (!%p971_p2) }
  0x69   : > { %v586_v2 = vld [vmem:[%s1559_s30] sm:$0xff] (!%p971_p2)  ;;  %1176 = vset.pattern.permute.xlu1 (!%p971_p2), %v1368_v3  ;;  %1175 = vset.pattern.permute.xlu0 (!%p971_p2), %v1368_v3 }
  0x6a   : > { %614 = vperm.xlu1 (!%p971_p2), %1176, %v588_v1   ;;  %604 = vperm.xlu0 (!%p971_p2), %1175, %v586_v2  }
  0x6b   : > { %999 = vmatpush3.bf16.msra.mxu0 %v1160_v4  ;;  %1037 = vmatpush3.bf16.msra.mxu1 %v1160_v4  ;;  %v589_v4 = vld [vmem:[%s1559_s30 + $0x18] sm:$0xff] (!%p971_p2) }
  0x6c   : > { %1000 = vmatprep.subr.bf16.mxu0 %v1161_v5  ;;  %1030 = vmatprep.subr.bf16.mxu1 %v1161_v5 }
  0x6e   : > { %619 = vperm.xlu1 (!%p971_p2), %1176, %v589_v4  }
  0x6f   : > { %1001 = vmatpush3.bf16.msra.mxu0 %v1161_v5  ;;  %1038 = vmatpush3.bf16.msra.mxu1 %v1161_v5  ;;  %v587_v5 = vld [vmem:[%s1559_s30 + $0x8] sm:$0xff] (!%p971_p2) }
  0x70   : > { %1002 = vmatprep.subr.bf16.mxu0 %v1162_v6  ;;  %1031 = vmatprep.subr.bf16.mxu1 %v1162_v6 }
  0x71   : > { %609 = vperm.xlu0 (!%p971_p2), %1175, %v587_v5  }
  0x73   : > { %1003 = vmatpush3.bf16.msra.mxu0 %v1162_v6  ;;  %1039 = vmatpush3.bf16.msra.mxu1 %v1162_v6  ;;  %v591_v6 = vld [vmem:[%s1559_s30 + $0x28] sm:$0xff] (!%p971_p2) }
  0x74   : > { %1004 = vmatprep.subr.bf16.mxu0 %v1163_v7  ;;  %1032 = vmatprep.subr.bf16.mxu1 %v1163_v7 }
  0x75   : > { %629 = vperm.xlu1 (!%p971_p2), %1176, %v591_v6  }
  0x77   : > { %1005 = vmatpush3.bf16.msra.mxu0 %v1163_v7  ;;  %1040 = vmatpush3.bf16.msra.mxu1 %v1163_v7  ;;  %v590_v7 = vld [vmem:[%s1559_s30 + $0x20] sm:$0xff] (!%p971_p2) }
  0x78   : > { %1006 = vmatprep.subr.bf16.mxu0 %v1164_v8  ;;  %1033 = vmatprep.subr.bf16.mxu1 %v1164_v8 }
  0x79   : > { %624 = vperm.xlu0 (!%p971_p2), %1175, %v590_v7  }
  0x7b   : > { %1007 = vmatpush3.bf16.msra.mxu0 %v1164_v8  ;;  %1041 = vmatpush3.bf16.msra.mxu1 %v1164_v8  ;;  %v593_v8 = vld [vmem:[%s1559_s30 + $0x38] sm:$0xff] (!%p971_p2) }
  0x7c   : > { %1008 = vmatprep.subr.bf16.mxu0 %v1165_v9  ;;  %1034 = vmatprep.subr.bf16.mxu1 %v1165_v9 }
  0x7d   : > { %639 = vperm.xlu1 (!%p971_p2), %1176, %v593_v8  }
  0x7f   : > { %1009 = vmatpush3.bf16.msra.mxu0 %v1165_v9  ;;  %1042 = vmatpush3.bf16.msra.mxu1 %v1165_v9  ;;  %v592_v9 = vld [vmem:[%s1559_s30 + $0x30] sm:$0xff] (!%p971_p2) }
  0x80   : > { %1010 = vmatprep.subr.bf16.mxu0 %v1166_v10  ;;  %1035 = vmatprep.subr.bf16.mxu1 %v1166_v10 }
  0x81   : > { %634 = vperm.xlu0 (!%p971_p2), %1175, %v592_v9  }
  0x83   : > { %1011 = vmatpush3.bf16.msra.mxu0 %v1166_v10  ;;  %1043 = vmatpush3.bf16.msra.mxu1 %v1166_v10  ;;  %v595_v10 = vld [vmem:[%s1559_s30 + $0x48] sm:$0xff] (!%p971_p2) }
  0x84   : > { %649 = vperm.xlu1 (!%p971_p2), %1176, %v595_v10  }
  0x86   : > { %1013 = vmatmul.mubr.bf16.vlgmr.msra.gmra.mrb[0].mxu0 %v1169_v11  ;;  %1021 = vmatmul.mubr.bf16.vlgmr.msra.gmra.mrb[0].mxu1 %v1170_v12  ;;  %v594_v11 = vld [vmem:[%s1559_s30 + $0x40] sm:$0xff] (!%p971_p2)  ;;  %v597_v12 = vld [vmem:[%s1559_s30 + $0x58] sm:$0xff] (!%p971_p2) }
  0x87   : > { %1016 = vmatprep.mubr.bf16.mxu0 %v1171_v13  ;;  %1024 = vmatprep.mubr.bf16.mxu1 %v1172_v14  ;;  %v596_v13 = vld [vmem:[%s1559_s30 + $0x50] sm:$0xff] (!%p971_p2)  ;;  %v599_v14 = vld [vmem:[%s1559_s30 + $0x68] sm:$0xff] (!%p971_p2) }
  0x88   : > { %644 = vperm.xlu0 (!%p971_p2), %1175, %v594_v11   ;;  %659 = vperm.xlu1 (!%p971_p2), %1176, %v597_v12  }
  0x8c   : > { %654 = vperm.xlu0 (!%p971_p2), %1175, %v596_v13   ;;  %669 = vperm.xlu1 (!%p971_p2), %1176, %v599_v14  }
  0x8e   : > { %1017 = vmatmul.mubr.bf16.gmra.mrb[4].mxu0 %v1173_v15  ;;  %1025 = vmatmul.mubr.bf16.gmra.mrb[4].mxu1 %v1174_v16  ;;  %v598_v15 = vld [vmem:[%s1559_s30 + $0x60] sm:$0xff] (!%p971_p2)  ;;  %v601_v16 = vld [vmem:[%s1559_s30 + $0x78] sm:$0xff] (!%p971_p2) }
  0x90   : > { %664 = vperm.xlu0 (!%p971_p2), %1175, %v598_v15   ;;  %679 = vperm.xlu1 (!%p971_p2), %1176, %v601_v16  }
 0x159   : > { %v1014_v21 = vpop.f32.mrb[0].mxu0  ;;  %v1022_v22 = vpop.f32.mrb[0].mxu1 }
 0x15a   : > { %v536_v25 = vadd.f32 %v1014_v21, %v327_v17  ;;  %v544_v26 = vadd.f32 %v1022_v22, %v335_v18  ;;  %v471_v27 = vpop.f32.mrb[1].mxu0  ;;  %v503_v28 = vpop.f32.mrb[1].mxu1  ;;  %v600_v17 = vld [vmem:[%s1559_s30 + $0x70] sm:$0xff] (!%p971_p2) }
 0x15b   : > { %v534_v31 = vadd.f32 %v471_v27, %v325_v19  ;;  %v542_v32 = vadd.f32 %v503_v28, %v333_v20  ;;  %v1015_v33 = vpop.f32.mrb[2].mxu0  ;;  %v1023_v34 = vpop.f32.mrb[2].mxu1  ;;  %674 = vperm.xlu0 (!%p971_p2), %1175, %v600_v17  }
 0x15c   : > { %552 = vst [vmem:[%s1561_s27 + $0x10] sm:$0xff] %v536_v25  ;;  %560 = vst [vmem:[%s1561_s27 + $0x50] sm:$0xff] %v544_v26  ;;  %v537_v35 = vadd.f32 %v1015_v33, %v328_v23  ;;  %v545_v36 = vadd.f32 %v1023_v34, %v336_v24  ;;  %v474_v37 = vpop.f32.mrb[3].mxu0  ;;  %v506_v38 = vpop.f32.mrb[3].mxu1 }
 0x15d   : > { %550 = vst [vmem:[%s1561_s27] sm:$0xff] %v534_v31  ;;  %558 = vst [vmem:[%s1561_s27 + $0x40] sm:$0xff] %v542_v32  ;;  %v535_v39 = vadd.f32 %v474_v37, %v326_v29  ;;  %v543_v40 = vadd.f32 %v506_v38, %v334_v30  ;;  %v615_v20 = vpop.permute.xlu1 (!%p971_p2), %614  ;;  %v605_v21 = vpop.permute.xlu0 (!%p971_p2), %604 }
 0x15e   : > { %553 = vst [vmem:[%s1561_s27 + $0x18] sm:$0xff] %v537_v35  ;;  %561 = vst [vmem:[%s1561_s27 + $0x58] sm:$0xff] %v545_v36 }
 0x15f   : > { %551 = vst [vmem:[%s1561_s27 + $0x8] sm:$0xff] %v535_v39  ;;  %559 = vst [vmem:[%s1561_s27 + $0x48] sm:$0xff] %v543_v40 }
 0x161   : > { %v1018_v45 = vpop.f32.mrb[4].mxu0  ;;  %v1026_v46 = vpop.f32.mrb[4].mxu1  ;;  %569 = sbr.rel (%p971_p2) target bundleno = 496 (0x1f0), region = 44 }
 0x162   : > { %v540_v49 = vadd.f32 %v1018_v45, %v331_v41  ;;  %v548_v50 = vadd.f32 %v1026_v46, %v339_v42  ;;  %v487_v51 = vpop.f32.mrb[5].mxu0  ;;  %v519_v52 = vpop.f32.mrb[5].mxu1 }
 0x163   : > { %v538_v55 = vadd.f32 %v487_v51, %v329_v43  ;;  %v546_v56 = vadd.f32 %v519_v52, %v337_v44  ;;  %v1019_v57 = vpop.f32.mrb[6].mxu0  ;;  %v1027_v58 = vpop.f32.mrb[6].mxu1  ;;  %v572_v18 = vld [vmem:[%s1561_s27 + $0x10] sm:$0xff] (!%p971_p2) }
 0x164   : > { %556 = vst [vmem:[%s1561_s27 + $0x30] sm:$0xff] %v540_v49  ;;  %564 = vst [vmem:[%s1561_s27 + $0x70] sm:$0xff] %v548_v50  ;;  %v541_v59 = vadd.f32 %v1019_v57, %v332_v47  ;;  %v549_v60 = vadd.f32 %v1027_v58, %v340_v48  ;;  %v490_v61 = vpop.f32.mrb[7].mxu0  ;;  %v522_v62 = vpop.f32.mrb[7].mxu1  ;;  %v570_v19 = vld [vmem:[%s1561_s27] sm:$0xff] (!%p971_p2)  ;;  %v684_v22 = vmul.f32 (!%p971_p2), %v615_v20, %v572_v18  ;;  %v580_v3 = vld [vmem:[%s1561_s27 + $0x50] sm:$0xff] (!%p971_p2) }
 0x165   : > { %554 = vst [vmem:[%s1561_s27 + $0x20] sm:$0xff] %v538_v55  ;;  %562 = vst [vmem:[%s1561_s27 + $0x60] sm:$0xff] %v546_v56  ;;  %v539_v63 = vadd.f32 %v490_v61, %v330_v53  ;;  %v547_v0 = vadd.f32 %v522_v62, %v338_v54  ;;  %v682_v23 = vmul.f32 (!%p971_p2), %v605_v21, %v570_v19  ;;  %v573_v24 = vld [vmem:[%s1561_s27 + $0x18] sm:$0xff] (!%p971_p2)  ;;  %v620_v26 = vpop.permute.xlu1 (!%p971_p2), %619  ;;  %v610_v27 = vpop.permute.xlu0 (!%p971_p2), %609  ;;  %v578_v55 = vld [vmem:[%s1561_s27 + $0x40] sm:$0xff] (!%p971_p2) }
 0x166   : > { %557 = vst [vmem:[%s1561_s27 + $0x38] sm:$0xff] %v541_v59  ;;  %565 = vst [vmem:[%s1561_s27 + $0x78] sm:$0xff] %v549_v60  ;;  %v571_v25 = vld [vmem:[%s1561_s27 + $0x8] sm:$0xff] (!%p971_p2)  ;;  %v685_v28 = vmul.f32 (!%p971_p2), %v620_v26, %v573_v24  ;;  %v738_v35 = vmul.f32 (!%p971_p2), %v684_v22, %v684_v22  ;;  %v581_v2 = vld [vmem:[%s1561_s27 + $0x58] sm:$0xff] (!%p971_p2) }
 0x167   : > { %555 = vst [vmem:[%s1561_s27 + $0x28] sm:$0xff] %v539_v63  ;;  %563 = vst [vmem:[%s1561_s27 + $0x68] sm:$0xff] %v547_v0  ;;  %v683_v29 = vmul.f32 (!%p971_p2), %v610_v27, %v571_v25  ;;  %v736_v32 = vmul.f32 (!%p971_p2), %v682_v23, %v682_v23  ;;  %v579_v54 = vld [vmem:[%s1561_s27 + $0x48] sm:$0xff] (!%p971_p2) }
 0x168   : > { %700 = vst [vmem:[%s1561_s27 + $0x10] sm:$0xff] %v684_v22  ;;  %698 = vst [vmem:[%s1561_s27] sm:$0xff] %v682_v23  ;;  %v739_v44 = vmul.f32 %v685_v28, %v685_v28 }
 0x169   : > { %701 = vst [vmem:[%s1561_s27 + $0x18] sm:$0xff] %v685_v28  ;;  %699 = vst [vmem:[%s1561_s27 + $0x8] sm:$0xff] %v683_v29  ;;  %v714_v33 = vadd.f32 %v683_v29, %v682_v23  ;;  %v737_v34 = vmul.f32 %v683_v29, %v683_v29  ;;  %v630_v36 = vpop.permute.xlu1 %629  ;;  %v625_v37 = vpop.permute.xlu0 %624 }
 0x16b   : > { %v715_v38 = vadd.f32 %v714_v33, %v684_v22  ;;  %v752_v39 = vadd.f32 %v737_v34, %v736_v32  ;;  %v576_v43 = vld [vmem:[%s1561_s27 + $0x30] sm:$0xff] }
 0x16c   : > { %v574_v31 = vld [vmem:[%s1561_s27 + $0x20] sm:$0xff]  ;;  %v584_v27 = vld [vmem:[%s1561_s27 + $0x70] sm:$0xff] }
 0x16d   : > { %v686_v41 = vmul.f32 %v625_v37, %v574_v31  ;;  %v577_v42 = vld [vmem:[%s1561_s27 + $0x38] sm:$0xff]  ;;  %v753_v45 = vadd.f32 %v752_v39, %v738_v35  ;;  %v716_v46 = vadd.f32 %v715_v38, %v685_v28  ;;  %v640_v48 = vpop.permute.xlu1 %639  ;;  %v635_v49 = vpop.permute.xlu0 %634  ;;  %v582_v15 = vld [vmem:[%s1561_s27 + $0x60] sm:$0xff] }
 0x16e   : > { %v575_v30 = vld [vmem:[%s1561_s27 + $0x28] sm:$0xff]  ;;  %v689_v52 = vmul.f32 %v640_v48, %v577_v42  ;;  %v688_v53 = vmul.f32 %v635_v49, %v576_v43  ;;  %v585_v26 = vld [vmem:[%s1561_s27 + $0x78] sm:$0xff] }
 0x16f   : > { %v687_v40 = vmul.f32 %v630_v36, %v575_v30  ;;  %702 = vst [vmem:[%s1561_s27 + $0x20] sm:$0xff] %v686_v41  ;;  %v740_v47 = vmul.f32 %v686_v41, %v686_v41  ;;  %v717_v50 = vadd.f32 %v716_v46, %v686_v41  ;;  %v754_v51 = vadd.f32 %v753_v45, %v739_v44  ;;  %v583_v14 = vld [vmem:[%s1561_s27 + $0x68] sm:$0xff] }
 0x170   : > { %705 = vst [vmem:[%s1561_s27 + $0x38] sm:$0xff] %v689_v52  ;;  %704 = vst [vmem:[%s1561_s27 + $0x30] sm:$0xff] %v688_v53  ;;  %v742_v59 = vmul.f32 %v688_v53, %v688_v53  ;;  %v743_v4 = vmul.f32 %v689_v52, %v689_v52 }
 0x171   : > { %703 = vst [vmem:[%s1561_s27 + $0x28] sm:$0xff] %v687_v40  ;;  %v741_v56 = vmul.f32 %v687_v40, %v687_v40  ;;  %v755_v57 = vadd.f32 %v754_v51, %v740_v47  ;;  %v718_v58 = vadd.f32 %v717_v50, %v687_v40  ;;  %v650_v60 = vpop.permute.xlu1 %649  ;;  %v645_v61 = vpop.permute.xlu0 %644 }
 0x172   : > { %v691_v0 = vmul.f32 %v650_v60, %v579_v54  ;;  %v690_v1 = vmul.f32 %v645_v61, %v578_v55 }
 0x173   : > { %v719_v62 = vadd.f32 %v718_v58, %v688_v53  ;;  %v756_v63 = vadd.f32 %v755_v57, %v741_v56 }
 0x174   : > { %707 = vst [vmem:[%s1561_s27 + $0x48] sm:$0xff] %v691_v0  ;;  %706 = vst [vmem:[%s1561_s27 + $0x40] sm:$0xff] %v690_v1  ;;  %v744_v7 = vmul.f32 %v690_v1, %v690_v1  ;;  %v745_v16 = vmul.f32 %v691_v0, %v691_v0 }
 0x175   : > { %v757_v5 = vadd.f32 %v756_v63, %v742_v59  ;;  %v720_v6 = vadd.f32 %v719_v62, %v689_v52  ;;  %v660_v8 = vpop.permute.xlu1 %659  ;;  %v655_v9 = vpop.permute.xlu0 %654 }
 0x176   : > { %v693_v12 = vmul.f32 %v660_v8, %v581_v2  ;;  %v692_v13 = vmul.f32 %v655_v9, %v580_v3 }
 0x177   : > { %v721_v10 = vadd.f32 %v720_v6, %v690_v1  ;;  %v758_v11 = vadd.f32 %v757_v5, %v743_v4 }
 0x178   : > { %709 = vst [vmem:[%s1561_s27 + $0x58] sm:$0xff] %v693_v12  ;;  %708 = vst [vmem:[%s1561_s27 + $0x50] sm:$0xff] %v692_v13  ;;  %v746_v19 = vmul.f32 %v692_v13, %v692_v13  ;;  %v747_v28 = vmul.f32 %v693_v12, %v693_v12 }
 0x179   : > { %v759_v17 = vadd.f32 %v758_v11, %v744_v7  ;;  %v722_v18 = vadd.f32 %v721_v10, %v691_v0  ;;  %v670_v20 = vpop.permute.xlu1 %669  ;;  %v665_v21 = vpop.permute.xlu0 %664 }
 0x17a   : > { %v695_v24 = vmul.f32 %v670_v20, %v583_v14  ;;  %v694_v25 = vmul.f32 %v665_v21, %v582_v15 }
 0x17b   : > { %v723_v22 = vadd.f32 %v722_v18, %v692_v13  ;;  %v760_v23 = vadd.f32 %v759_v17, %v745_v16 }
 0x17c   : > { %711 = vst [vmem:[%s1561_s27 + $0x68] sm:$0xff] %v695_v24  ;;  %710 = vst [vmem:[%s1561_s27 + $0x60] sm:$0xff] %v694_v25  ;;  %v748_v31 = vmul.f32 %v694_v25, %v694_v25  ;;  %v749_v38 = vmul.f32 %v695_v24, %v695_v24 }
 0x17d   : > { %v761_v29 = vadd.f32 %v760_v23, %v746_v19  ;;  %v724_v30 = vadd.f32 %v723_v22, %v693_v12  ;;  %v680_v32 = vpop.permute.xlu1 %679 }
 0x17e   : > { %v697_v36 = vmul.f32 %v680_v32, %v585_v26 }
 0x17f   : > { %v725_v34 = vadd.f32 %v724_v30, %v694_v25  ;;  %v762_v35 = vadd.f32 %v761_v29, %v747_v28 }
 0x180   : > { %713 = vst [vmem:[%s1561_s27 + $0x78] sm:$0xff] %v697_v36  ;;  %v751_v44 = vmul.f32 %v697_v36, %v697_v36 }
 0x181   : > { %v763_v39 = vadd.f32 %v762_v35, %v748_v31  ;;  %v726_v40 = vadd.f32 %v725_v34, %v695_v24 }
 0x183   : > { %v764_v43 = vadd.f32 %v763_v39, %v749_v38 }
 0x1da   : > { %v675_v33 = vpop.permute.xlu0 %674 }
 0x1db   : > { %v696_v37 = vmul.f32 %v675_v33, %v584_v27 }
 0x1dd   : > { %712 = vst [vmem:[%s1561_s27 + $0x70] sm:$0xff] %v696_v37  ;;  %v727_v41 = vadd.f32 %v726_v40, %v696_v37  ;;  %v750_v42 = vmul.f32 %v696_v37, %v696_v37 }
 0x1df   : > { %v728_v45 = vadd.f32 %v727_v41, %v697_v36  ;;  %v765_v46 = vadd.f32 %v764_v43, %v750_v42 }
 0x1e1   : > { %v729_v47 = vrot.slane %v728_v45, 4  ;;  %v766_v48 = vadd.f32 %v765_v46, %v751_v44 }
 0x1e3   : > { %v730_v49 = vadd.f32 %v729_v47, %v728_v45  ;;  %v767_v50 = vrot.slane %v766_v48, 4 }
 0x1e5   : > { %v731_v51 = vrot.slane %v730_v49, 2  ;;  %v768_v52 = vadd.f32 %v767_v50, %v766_v48 }
 0x1e7   : > { %v732_v53 = vadd.f32 %v731_v51, %v730_v49  ;;  %v769_v54 = vrot.slane %v768_v52, 2 }
 0x1e9   : > { %v733_v55 = vrot.slane %v732_v53, 1  ;;  %v770_v56 = vadd.f32 %v769_v54, %v768_v52 }
 0x1eb   : > { %v734_v57 = vadd.f32 %v733_v55, %v732_v53  ;;  %v771_v58 = vrot.slane %v770_v56, 1 }
 0x1ed   : > { %735 = vst [vmem:[%s1563_s8] sm:$0x1] %v734_v57  ;;  %v772_v59 = vadd.f32 %v771_v58, %v770_v56 }
 0x1ef   : > { %773 = vst [vmem:[%s1563_s8 + $0x1] sm:$0x1] %v772_v59 }
 0x1f0 PF: > { %s979_s21 = sshll.u32 %s1349_s22, 11  ;;  %s793_s30 = sshll.u32 %s1561_s27, 4  ;;  %s1694_s30 = int_to_ptr.vmem [resolvable:$true] %s793_s30 }
 0x1f1   : > { %s1691_s28 = scalar_lea.hbm %s1785_s3, %s979_s21  ;;  %s775_s18 = scalar_lea.sflag [#allocation4], %s1551_s29 }
 0x1f2   : > { %s1207_s7 = scalar_lea.vmem %s1694_s30, 2048  ;;  %p1804_p0 = scmp.ne.s32.totalorder %s1797_s11, 0 }
 0x1f3   : > { %p1208_p4 = scmp.ne.s32.totalorder %s1694_s30, %s1207_s7  ;;  %s1369_s13 = smov [#allocation5]  }
 0x1f4   : > { %s1211_s10 = sshll.u32 %s1369_s13, 4  ;;  %s1212_s10 = int_to_ptr.vmem [resolvable:$false] %s1211_s10 }
 0x1f5   : > { %p1209_p1 = pnand %p1208_p4, %p1804_p0  ;;  %s1213_s6 = scalar_lea.vmem %s1212_s10, 4096 }
 0x1f6   : > { %p1214_p6 = scmp.lt.s32.totalorder %s1694_s30, %s1212_s10  ;;  %p1215_p9 = scmp.lt.s32.totalorder %s1213_s6, %s1207_s7 }
 0x1f7   : > { %p1210_p3 = pneg %p1209_p1 }
 0x1f8   : > { %p1216_p10 = por %p1215_p9, %p1214_p6 }
 0x1fa   : > { %p1217_p11 = pnand %p1216_p10, %p1210_p3 }
 0x1fc   : > { %1220 = shalt.err (!%p1217_p11)
}
 0x1fd   : > { %s1221_s27 = scalar_lea.hbm %s1691_s28, 2048  ;;  %s1225_s5 = scalar_lea.hbm %s1785_s3, 6144 }
 0x1fe   : > { %p1222_p5 = scmp.ne.s32.totalorder %s1691_s28, %s1221_s27  ;;  %p1226_p12 = scmp.lt.u32.totalorder %s1691_s28, %s1785_s3 }
 0x1ff   : > { %p1227_p7 = scmp.lt.u32.totalorder %s1225_s5, %s1221_s27  ;;  %p1229_p4 = scmp.lt.u32.totalorder %s1221_s27, %s1691_s28 }
 0x200   : > { %p1223_p8 = pnand %p1222_p5, %p1804_p0 }
 0x201   : > { %p1228_p2 = por %p1227_p7, %p1226_p12 }
 0x202   : > { %p1224_p13 = pneg %p1223_p8 }
 0x203   : > { %p1230_p1 = por %p1229_p4, %p1228_p2 }
 0x205   : > { %p1231_p3 = pnand %p1230_p1, %p1224_p13 }
 0x207   : > { %1234 = shalt.err (!%p1231_p3)
}
 0x208   : > { %s1370_s7 = smov 128   ;;  %s1371_s10 = smov 8  }
 0x209   : > { %1047 = dma.vmem_to_hbm [thread:$0]  (%p1804_p0), %s1694_s30, 2048, %s1691_s28, %s775_s18, %s1370_s7, %s1370_s7, %s1371_s10  }
 0x20a   : > { %s976_s6 = sshll.u32 %s1349_s22, 7  ;;  %s809_s9 = sshll.u32 %s1563_s8, 4  ;;  %s810_s9 = int_to_ptr.vmem [resolvable:$true] %s809_s9 }
 0x20b   : > { %s1725_s5 = scalar_lea.hbm %s1786_s4, %s976_s6  ;;  %s780_s26 = scalar_lea.sflag [#allocation7], %s1551_s29 }
 0x20c   : > { %s1235_s13 = scalar_lea.vmem %s810_s9, 128  ;;  %s1372_s0 = smov [#allocation6]  }
 0x20d   : > { %p1236_p6 = scmp.ne.s32.totalorder %s810_s9, %s1235_s13  ;;  %s1239_s1 = sshll.u32 %s1372_s0, 4  ;;  %s1240_s1 = int_to_ptr.vmem [resolvable:$false] %s1239_s1 }
 0x20e   : > { %s1241_s2 = scalar_lea.vmem %s1240_s1, 256  ;;  %p1242_p11 = scmp.lt.s32.totalorder %s810_s9, %s1240_s1 }
 0x20f   : > { %p1237_p9 = pnand %p1236_p6, %p1804_p0  ;;  %p1243_p5 = scmp.lt.s32.totalorder %s1241_s2, %s1235_s13 }
 0x211   : > { %p1238_p10 = pneg %p1237_p9  ;;  %p1244_p8 = por %p1243_p5, %p1242_p11 }
 0x213   : > { %p1245_p13 = pnand %p1244_p8, %p1238_p10 }
 0x215   : > { %1248 = shalt.err (!%p1245_p13)
}
 0x216   : > { %s1249_s22 = scalar_lea.hbm %s1725_s5, 128  ;;  %s1253_s0 = scalar_lea.hbm %s1786_s4, 384 }
 0x217   : > { %p1250_p12 = scmp.ne.s32.totalorder %s1725_s5, %s1249_s22  ;;  %p1254_p4 = scmp.lt.u32.totalorder %s1725_s5, %s1786_s4 }
 0x218   : > { %p1255_p1 = scmp.lt.u32.totalorder %s1253_s0, %s1249_s22  ;;  %p1257_p6 = scmp.lt.u32.totalorder %s1249_s22, %s1725_s5 }
 0x219   : > { %p1251_p7 = pnand %p1250_p12, %p1804_p0 }
 0x21a   : > { %p1256_p3 = por %p1255_p1, %p1254_p4 }
 0x21b   : > { %p1252_p2 = pneg %p1251_p7 }
 0x21c   : > { %p1258_p9 = por %p1257_p6, %p1256_p3 }
 0x21e   : > { %p1259_p10 = pnand %p1258_p9, %p1252_p2 }
 0x220   : > { %1262 = shalt.err (!%p1259_p10)
}
 0x221   : > { %1048 = dma.vmem_to_hbm [thread:$0]  (%p1804_p0), %s810_s9, 128, %s1725_s5, %s780_s26  }
 0x222 PF: > { %p1063_p11 = scmp.ge.s32.totalorder %s1361_s25, 2  ;;  %s821_s2 = sand.u32 1, %s1321_s15  }
 0x223   : > { %p1805_p5 = scmp.ne.s32.totalorder %s1799_s14, 0  ;;  %s822_s30 = scalar_lea.sflag [#allocation4], %s821_s2 }
 0x225   : > { %p1056_p8 = pnand %p1063_p11, %p1805_p5 }
 0x227   : > { %1312 = dma.done.wait (!%p1056_p8), %s822_s30, 2048  }
 0x228   : > { %1314 = vsyncadd (!%p1056_p8), %s822_s30, 4294965248  ;;  %s831_s18 = scalar_lea.sflag [#allocation7], %s821_s2 }
 0x229   : > { %1316 = dma.done.wait (!%p1056_p8), %s831_s18, 128  }
 0x22a   : > { %1318 = vsyncadd (!%p1056_p8), %s831_s18, 4294967168  ;;  %s24_s25 = sadd.s32 1, %s1361_s25   ;;  %s1806_s11 = sld [smem:[#allocation13_spill]] }
 0x22b   : > { %p21_p13 = scmp.ge.s32.totalorder %s24_s25, 11   ;;  %s1807_s7 = sld [smem:[#allocation11_spill]] }
 0x22c   : > { %s1808_s14 = sld [smem:[#allocation12_spill]]  ;;  %s1809_s15 = smov %s1325_s16 }
 0x22d   : > { %s1810_s16 = smov %s1329_s17  ;;  %s1811_s17 = smov %s1485_s12 }
 0x22e   : > { %s1812_s18 = smov %s1337_s19  ;;  %s1813_s19 = smov %s1341_s20 }
 0x22f   : > { %s1815_s21 = smov %s1353_s23  ;;  %s1816_s22 = smov %s1357_s24 }
 0x230   : > { %s1814_s20 = smov %s1806_s11  ;;  %23 = sbr.rel (!%p21_p13) target bundleno = 15 (0xf), region = 106 }
 0x231   : > { %s1817_s23 = smov %s1807_s7 }
 0x232   : > { %s1818_s24 = smov %s1808_s14 }
 0x237   :  { %836 = vsyncpa [#allocation3], 1 }
 0x238   :  { %838 = vsyncpa [#allocation3 + $0x1], 1 }
 0x239   :  { %839 = vsyncpa [#allocation4], 1 }
 0x23a   :  { %841 = vsyncpa [#allocation4 + $0x1], 1 }
 0x23b   :  { %842 = vsyncpa [#allocation7], 1 }
 0x23c   :  { %844 = vsyncpa [#allocation7 + $0x1], 1 }

</bundles_post_ra>
